<compile_context>
chip_gen: v5e
topology: v5e:2x2
jax: 0.10.0
libtpu: 0.0.40
codegen_flags: <defaults>
</compile_context>

<pallas_src>
import functools

import jax
import jax.numpy as jnp
from jax.experimental import pallas as pl
from jax.experimental.pallas import tpu as pltpu


# ----------------------------------------------------------------------------- kernel
def gin_kernel(a_ref, x_ref, w1_ref, b1_ref, w2_ref, b2_ref, o_ref, acc_ref,
               *, num_classes):
    k = pl.program_id(1)

    @pl.when(k == 0)
    def _init():
        acc_ref[...] = jnp.zeros_like(acc_ref)

    # acc += A'[i-tile, k-tile] @ x[k-tile]   (bf16 MXU, f32 accumulate).
    # A' already contains the +I self term, so acc converges to h = x + agg.
    acc_ref[...] += jnp.dot(
        a_ref[...], x_ref[...], preferred_element_type=jnp.float32
    )

    @pl.when(k == pl.num_programs(1) - 1)
    def _epilogue():
        # MLP (Linear -> ReLU -> Linear), relu, log_softmax -- once per row tile.
        h1 = jnp.maximum(
            jnp.dot(acc_ref[...], w1_ref[...], preferred_element_type=jnp.float32)
            + b1_ref[...],
            0.0,
        )                                                              # [tm, H]  f32
        h2 = jnp.dot(h1, w2_ref[...], preferred_element_type=jnp.float32) \
            + b2_ref[...]                                              # [tm, Cpad]
        y = jnp.maximum(h2, 0.0)
        # Exclude lane-padding columns (>= num_classes) from the softmax.
        col = jax.lax.broadcasted_iota(jnp.int32, y.shape, 1)
        z = jnp.where(col < num_classes, y, jnp.float32(-1e30))
        m = jnp.max(z, axis=1, keepdims=True)
        z = z - m
        lse = jnp.log(jnp.sum(jnp.exp(z), axis=1, keepdims=True))
        o_ref[...] = (z - lse).astype(o_ref.dtype)


# ----------------------------------------------------------------------------- wrapper
def gin_forward(x, edge_index, w1, b1, w2, b2, *, tile=128):
    """x: [N, F] f32; edge_index: [2, E] int32 (row 0 = src, row 1 = dst)."""
    N, F = x.shape
    H = w1.shape[1]
    C = w2.shape[1]

    Np = pl.cdiv(N, tile) * tile              # pad node count to the tile size
    Cpad = pl.cdiv(max(C, 128), 128) * 128    # lane-dense class dimension

    # Glue: densify edge list into A'[dst, src] = multiplicity + (1+eps)*I (eps=0).
    # Stored in bf16 (small integer counts are exact in bf16).
    src, dst = edge_index[0], edge_index[1]
    adj = jnp.zeros((Np, Np), jnp.float32).at[dst, src].add(1.0)
    diag = jnp.arange(N)
    adj = adj.at[diag, diag].add(1.0).astype(jnp.bfloat16)

    xp = jnp.pad(x, ((0, Np - N), (0, 0))).astype(jnp.bfloat16)
    w1f = w1.astype(jnp.float32)
    b1r = b1.reshape(1, H).astype(jnp.float32)
    w2p = jnp.pad(w2, ((0, 0), (0, Cpad - C))).astype(jnp.float32)
    b2r = jnp.pad(b2, (0, Cpad - C)).reshape(1, Cpad).astype(jnp.float32)

    tm = tk = tile

    out_padded = pl.pallas_call(
        functools.partial(gin_kernel, num_classes=C),
        out_shape=jax.ShapeDtypeStruct((Np, Cpad), jnp.float32),
        grid_spec=pltpu.PrefetchScalarGridSpec(
            num_scalar_prefetch=0,
            grid=(Np // tm, Np // tk),                         # (row tiles, src tiles)
            in_specs=[
                pl.BlockSpec((tm, tk), lambda i, k: (i, k)),   # A' tile
                pl.BlockSpec((tk, F), lambda i, k: (k, 0)),    # x source rows
                pl.BlockSpec((F, H), lambda i, k: (0, 0)),     # W1 (resident)
                pl.BlockSpec((1, H), lambda i, k: (0, 0)),     # b1 (resident)
                pl.BlockSpec((H, Cpad), lambda i, k: (0, 0)),  # W2 (resident)
                pl.BlockSpec((1, Cpad), lambda i, k: (0, 0)),  # b2 (resident)
            ],
            out_specs=pl.BlockSpec((tm, Cpad), lambda i, k: (i, 0)),
            scratch_shapes=[pltpu.VMEM((tm, F), jnp.float32)],  # f32 accumulator
        ),
        compiler_params=pltpu.CompilerParams(
            dimension_semantics=("parallel", "arbitrary"),
        ),
    )(adj, xp, w1f, b1r, w2p, b2r)

    return out_padded[:N, :C]


# ----------------------------------------------------------------------------- references
def reference_forward(x, edge_index, w1, b1, w2, b2):
    """Pure-f32 reference matching the PyTorch module math."""
    src, dst = edge_index[0], edge_index[1]
    agg = jnp.zeros_like(x).at[dst].add(x[src])
    h = x + agg
    h1 = jnp.maximum(h @ w1 + b1, 0.0)
    y = jnp.maximum(h1 @ w2 + b2, 0.0)
    return jax.nn.log_softmax(y, axis=1)


def reference_forward_mirrored(x, edge_index, w1, b1, w2, b2):
    """Reference mirroring the kernel's bf16-aggregation / f32-MLP dtype policy."""
    N = x.shape[0]
    src, dst = edge_index[0], edge_index[1]
    adj = jnp.zeros((N, N), jnp.float32).at[dst, src].add(1.0)
    adj = adj.at[jnp.arange(N), jnp.arange(N)].add(1.0).astype(jnp.bfloat16)
    xb = x.astype(jnp.bfloat16)
    agg = jnp.dot(adj, xb, preferred_element_type=jnp.float32)
    h1 = jnp.maximum(agg @ w1 + b1, 0.0)
    y = jnp.maximum(h1 @ w2 + b2, 0.0)
    return jax.nn.log_softmax(y, axis=1)


if __name__ == "__main__":
    # Small deterministic problem: N=256 nodes (2 row tiles x 2 source tiles),
    # 32 input features, MLP([32, 256, 64]) -> 64-way log-softmax.
    N, F, H, C, E = 256, 32, 256, 64, 1024
    key = jax.random.PRNGKey(0)
    kx, ke, kw1, kb1, kw2, kb2 = jax.random.split(key, 6)

    x = jax.random.normal(kx, (N, F), jnp.float32)
    edge_index = jax.random.randint(ke, (2, E), 0, N, jnp.int32)

    w1 = jax.random.normal(kw1, (F, H), jnp.float32) * (1.0 / jnp.sqrt(F))
    b1 = jax.random.normal(kb1, (H,), jnp.float32) * 0.01
    w2 = jax.random.normal(kw2, (H, C), jnp.float32) * (1.0 / jnp.sqrt(H))
    b2 = jax.random.normal(kb2, (C,), jnp.float32) * 0.01

    out = jax.block_until_ready(gin_forward(x, edge_index, w1, b1, w2, b2))
    assert out.shape == (N, C)

    # Tight check against a reference mirroring the kernel's dtype policy.
    ref_mirror = reference_forward_mirrored(x, edge_index, w1, b1, w2, b2)
    assert jnp.allclose(out, ref_mirror, atol=2e-2, rtol=2e-2), \
        "mismatch vs dtype-mirrored reference"

    # Loose sanity check against the full-f32 reference (bf16 inputs lose mantissa).
    ref_f32 = reference_forward(x, edge_index, w1, b1, w2, b2)
    assert jnp.allclose(out, ref_f32, atol=0.5, rtol=0.05), "mismatch vs f32 reference"

    print("KERNEL_OK")
</pallas_src>

<mosaic_0001>
module attributes {stable_mosaic.version = 11 : i64} {
  func.func @gin_kernel(%arg0: i32, %arg1: i32, %arg2: memref<128x128xbf16, #tpu.memory_space<vmem>>, %arg3: memref<128x32xbf16, #tpu.memory_space<vmem>>, %arg4: memref<32x256xf32, #tpu.memory_space<vmem>>, %arg5: memref<1x256xf32, #tpu.memory_space<vmem>>, %arg6: memref<256x128xf32, #tpu.memory_space<vmem>>, %arg7: memref<1x128xf32, #tpu.memory_space<vmem>>, %arg8: memref<128x128xf32, #tpu.memory_space<vmem>>, %arg9: memref<128x32xf32, #tpu.memory_space<vmem>>) attributes {dimension_semantics = [#tpu.dimension_semantics<parallel>, #tpu.dimension_semantics<arbitrary>], iteration_bounds = array<i64: 2, 2>, scalar_prefetch = 0 : i64, scratch_operands = 1 : i64, tpu.core_type = #tpu.core_type<tc>, window_params = [{transform_indices = @transform_0, window_bounds = array<i64: 128, 128>}, {transform_indices = @transform_1, window_bounds = array<i64: 128, 32>}, {pipeline_mode = #tpu.pipeline_mode<synchronous>, transform_indices = @transform_2, window_bounds = array<i64: 32, 256>}, {pipeline_mode = #tpu.pipeline_mode<synchronous>, transform_indices = @transform_3, window_bounds = array<i64: 1, 256>}, {pipeline_mode = #tpu.pipeline_mode<synchronous>, transform_indices = @transform_4, window_bounds = array<i64: 256, 128>}, {pipeline_mode = #tpu.pipeline_mode<synchronous>, transform_indices = @transform_5, window_bounds = array<i64: 1, 128>}, {transform_indices = @transform_6, window_bounds = array<i64: 128, 128>}]} {
    %c0_i32 = arith.constant 0 : i32
    %0 = arith.cmpi eq, %arg1, %c0_i32 : i32
    %1 = arith.extui %0 : i1 to i32
    %c0_i32_0 = arith.constant 0 : i32
    %2 = arith.cmpi ne, %1, %c0_i32_0 : i32
    scf.if %2 {
      %cst_9 = arith.constant 0.000000e+00 : f32
      %12 = vector.broadcast %cst_9 : f32 to vector<128x32xf32>
      %c0_10 = arith.constant 0 : index
      %c0_11 = arith.constant 0 : index
      %13 = vector.load %arg9[%c0_10, %c0_11] : memref<128x32xf32, #tpu.memory_space<vmem>>, vector<128x32xf32>
      tpu.vector_store %arg9[%c0_10, %c0_11], %12 {strides = array<i32>} : memref<128x32xf32, #tpu.memory_space<vmem>>, vector<128x32xf32>,
    } else {
    }
    %c0 = arith.constant 0 : index
    %c0_1 = arith.constant 0 : index
    %3 = vector.load %arg9[%c0, %c0_1] : memref<128x32xf32, #tpu.memory_space<vmem>>, vector<128x32xf32>
    %c0_2 = arith.constant 0 : index
    %c0_3 = arith.constant 0 : index
    %4 = vector.load %arg2[%c0_2, %c0_3] : memref<128x128xbf16, #tpu.memory_space<vmem>>, vector<128x128xbf16>
    %c0_4 = arith.constant 0 : index
    %c0_5 = arith.constant 0 : index
    %5 = vector.load %arg3[%c0_4, %c0_5] : memref<128x32xbf16, #tpu.memory_space<vmem>>, vector<128x32xbf16>
    %cst = arith.constant dense<0.000000e+00> : vector<128x32xf32>
    %6 = tpu.matmul %4, %5, %cst {dimension_numbers = #tpu.dot_dimension_numbers<[1], [0], [0], [1], [0, 0, 1, 1], [], []>} : vector<128x128xbf16>, vector<128x32xbf16>, vector<128x32xf32> -> vector<128x32xf32>
    %7 = arith.addf %3, %6 : vector<128x32xf32>
    %c0_6 = arith.constant 0 : index
    %c0_7 = arith.constant 0 : index
    %8 = vector.load %arg9[%c0_6, %c0_7] : memref<128x32xf32, #tpu.memory_space<vmem>>, vector<128x32xf32>
    tpu.vector_store %arg9[%c0_6, %c0_7], %7 {strides = array<i32>} : memref<128x32xf32, #tpu.memory_space<vmem>>, vector<128x32xf32>,
    %c1_i32 = arith.constant 1 : i32
    %9 = arith.cmpi eq, %arg1, %c1_i32 : i32
    %10 = arith.extui %9 : i1 to i32
    %c0_i32_8 = arith.constant 0 : i32
    %11 = arith.cmpi ne, %10, %c0_i32_8 : i32
    scf.if %11 {
      %c0_9 = arith.constant 0 : index
      %c0_10 = arith.constant 0 : index
      %12 = vector.load %arg9[%c0_9, %c0_10] : memref<128x32xf32, #tpu.memory_space<vmem>>, vector<128x32xf32>
      %c0_11 = arith.constant 0 : index
      %c0_12 = arith.constant 0 : index
      %13 = vector.load %arg4[%c0_11, %c0_12] : memref<32x256xf32, #tpu.memory_space<vmem>>, vector<32x256xf32>
      %cst_13 = arith.constant dense<0.000000e+00> : vector<128x256xf32>
      %14 = tpu.matmul %12, %13, %cst_13 {dimension_numbers = #tpu.dot_dimension_numbers<[1], [0], [0], [1], [0, 0, 1, 1], [], []>} : vector<128x32xf32>, vector<32x256xf32>, vector<128x256xf32> -> vector<128x256xf32>
      %c0_14 = arith.constant 0 : index
      %c0_15 = arith.constant 0 : index
      %15 = vector.load %arg5[%c0_14, %c0_15] : memref<1x256xf32, #tpu.memory_space<vmem>>, vector<1x256xf32>
      %16 = vector.broadcast %15 : vector<1x256xf32> to vector<128x256xf32>
      %17 = arith.addf %14, %16 : vector<128x256xf32>
      %cst_16 = arith.constant 0.000000e+00 : f32
      %18 = vector.broadcast %cst_16 : f32 to vector<128x256xf32>
      %19 = arith.maximumf %17, %18 : vector<128x256xf32>
      %c0_17 = arith.constant 0 : index
      %c0_18 = arith.constant 0 : index
      %20 = vector.load %arg6[%c0_17, %c0_18] : memref<256x128xf32, #tpu.memory_space<vmem>>, vector<256x128xf32>
      %cst_19 = arith.constant dense<0.000000e+00> : vector<128x128xf32>
      %21 = tpu.matmul %19, %20, %cst_19 {dimension_numbers = #tpu.dot_dimension_numbers<[1], [0], [0], [1], [0, 0, 1, 1], [], []>} : vector<128x256xf32>, vector<256x128xf32>, vector<128x128xf32> -> vector<128x128xf32>
      %c0_20 = arith.constant 0 : index
      %c0_21 = arith.constant 0 : index
      %22 = vector.load %arg7[%c0_20, %c0_21] : memref<1x128xf32, #tpu.memory_space<vmem>>, vector<1x128xf32>
      %23 = vector.broadcast %22 : vector<1x128xf32> to vector<128x128xf32>
      %24 = arith.addf %21, %23 : vector<128x128xf32>
      %cst_22 = arith.constant 0.000000e+00 : f32
      %25 = vector.broadcast %cst_22 : f32 to vector<128x128xf32>
      %26 = arith.maximumf %24, %25 : vector<128x128xf32>
      %27 = tpu.iota {dimensions = array<i32: 1>} : vector<128x128xi32>
      %c64_i32 = arith.constant 64 : i32
      %28 = vector.broadcast %c64_i32 : i32 to vector<128x128xi32>
      %29 = arith.cmpi slt, %27, %28 : vector<128x128xi32>
      %cst_23 = arith.constant -1.000000e+30 : f32
      %30 = vector.broadcast %cst_23 : f32 to vector<128x128xf32>
      %31 = arith.select %29, %26, %30 : vector<128x128xi1>, vector<128x128xf32>
      %cst_24 = arith.constant dense<0xFF800000> : vector<128xf32>
      %32 = vector.multi_reduction <maximumf>, %31, %cst_24 [1] : vector<128x128xf32> to vector<128xf32>
      %33 = vector.shape_cast %32 : vector<128xf32> to vector<128x1xf32>
      %34 = vector.broadcast %33 : vector<128x1xf32> to vector<128x128xf32>
      %35 = arith.subf %31, %34 : vector<128x128xf32>
      %36 = math.exp %35 : vector<128x128xf32>
      %cst_25 = arith.constant dense<0.000000e+00> : vector<128xf32>
      %37 = vector.multi_reduction <add>, %36, %cst_25 [1] : vector<128x128xf32> to vector<128xf32>
      %38 = vector.shape_cast %37 : vector<128xf32> to vector<128x1xf32>
      %39 = math.log %38 : vector<128x1xf32>
      %40 = vector.broadcast %39 : vector<128x1xf32> to vector<128x128xf32>
      %41 = arith.subf %35, %40 : vector<128x128xf32>
      %c0_26 = arith.constant 0 : index
      %c0_27 = arith.constant 0 : index
      %42 = vector.load %arg8[%c0_26, %c0_27] : memref<128x128xf32, #tpu.memory_space<vmem>>, vector<128x128xf32>
      tpu.vector_store %arg8[%c0_26, %c0_27], %41 {strides = array<i32>} : memref<128x128xf32, #tpu.memory_space<vmem>>, vector<128x128xf32>,
    } else {
    }
    return
  }
  func.func @transform_0(%arg0: i32, %arg1: i32) -> (i32, i32) {
    %c0_i32 = arith.constant 0 : i32
    return %arg0, %arg1 : i32, i32
  }
  func.func @transform_1(%arg0: i32, %arg1: i32) -> (i32, i32) {
    %c0_i32 = arith.constant 0 : i32
    %c0_i32_0 = arith.constant 0 : i32
    return %arg1, %c0_i32 : i32, i32
  }
  func.func @transform_2(%arg0: i32, %arg1: i32) -> (i32, i32) {
    %c0_i32 = arith.constant 0 : i32
    %c0_i32_0 = arith.constant 0 : i32
    %c0_i32_1 = arith.constant 0 : i32
    return %c0_i32, %c0_i32_0 : i32, i32
  }
  func.func @transform_3(%arg0: i32, %arg1: i32) -> (i32, i32) {
    %c0_i32 = arith.constant 0 : i32
    %c0_i32_0 = arith.constant 0 : i32
    %c0_i32_1 = arith.constant 0 : i32
    return %c0_i32, %c0_i32_0 : i32, i32
  }
  func.func @transform_4(%arg0: i32, %arg1: i32) -> (i32, i32) {
    %c0_i32 = arith.constant 0 : i32
    %c0_i32_0 = arith.constant 0 : i32
    %c0_i32_1 = arith.constant 0 : i32
    return %c0_i32, %c0_i32_0 : i32, i32
  }
  func.func @transform_5(%arg0: i32, %arg1: i32) -> (i32, i32) {
    %c0_i32 = arith.constant 0 : i32
    %c0_i32_0 = arith.constant 0 : i32
    %c0_i32_1 = arith.constant 0 : i32
    return %c0_i32, %c0_i32_0 : i32, i32
  }
  func.func @transform_6(%arg0: i32, %arg1: i32) -> (i32, i32) {
    %c0_i32 = arith.constant 0 : i32
    %c0_i32_0 = arith.constant 0 : i32
    return %arg0, %c0_i32 : i32, i32
  }
}

</mosaic_0001>

<bundles_post_ra>
// kernel: tpu_custom_call.1
= control target key start
LH: loop header
LB: loop body
LE: loop exit
PB: predicated region body
PF: predicated region fallthrough
CT: control target
= control target key end

     0   :  { %s2483_s0 = inlined_call_operand.hbm [shape: bf16[256,256], index: 0, kind: input, shape index: {}]   ;;  %s2484_s1 = inlined_call_operand.vmem [shape: bf16[256,32], index: 1, kind: input, shape index: {}]   ;;  %s2485_s2 = inlined_call_operand.vmem [shape: f32[32,256], index: 2, kind: input, shape index: {}]   ;;  %s2486_s3 = inlined_call_operand.vmem [shape: f32[1,256], index: 3, kind: input, shape index: {}]   ;;  %s2487_s4 = inlined_call_operand.hbm [shape: f32[256,128], index: 4, kind: input, shape index: {}]   ;;  %s2488_s5 = inlined_call_operand.vmem [shape: f32[1,128], index: 5, kind: input, shape index: {}]   ;;  %s2489_s6 = inlined_call_operand.hbm [shape: f32[256,128], index: 6, kind: output, shape index: {}]  }
   0x1   :  { %2499 = sst [smem:[#allocation18_spill]] %s2484_s1 }
   0x2   :  { %2500 = sst [smem:[#allocation19_spill]] %s2485_s2 }
   0x3   :  { %2501 = sst [smem:[#allocation20_spill]] %s2486_s3 }
   0x4   :  { %2502 = sst [smem:[#allocation21_spill]] %s2487_s4 }
   0x5   :  { %2503 = sst [smem:[#allocation22_spill]] %s2488_s5 }
   0x6   :  { %2504 = sst [smem:[#allocation23_spill]] %s2489_s6 }
   0x7   :  { %11 = vsyncpa [#allocation4], 0 }
   0x8   :  { %13 = vsyncpa [#allocation4 + $0x1], 0 }
   0x9   :  { %14 = vsyncpa [#allocation7], 0 }
   0xa   :  { %15 = vsyncpa [#allocation5], 0 }
   0xb   :  { %17 = vsyncpa [#allocation5 + $0x1], 0  ;;  %s1929_s21 = smov 0   ;;  %s1931_s22 = smov 0  }
   0xc   :  { %s1933_s23 = smov 0   ;;  %s1935_s24 = smov 0  }
   0xd   :  { %s1937_s25 = smov 0   ;;  %s1939_s26 = smov 0  }
   0xe   :  { %s1941_s27 = smov 0   ;;  %s1943_s28 = smov 0  }
   0xf   :  { %s1945_s29 = smov 0   ;;  %s1947_s30 = smov 0  }
  0x10   :  { %s1949_s7 = smov 0  }
  0x11 LB: > { %2505 = sst [smem:[#allocation12_spill]] %s1844_s21  ;;  %s1321_s8 = sadd.s32 4294967295, %s1884_s7   ;;  %s1884_s7 = sphi %s1949_s7, %s23_s7   ;;  %s1880_s30 = sphi %s1947_s30, %s2541_s30   ;;  %s1876_s29 = sphi %s1945_s29, %s2540_s29   ;;  %s1872_s28 = sphi %s1943_s28, %s2539_s28   ;;  %s1868_s27 = sphi %s1941_s27, %s2538_s27   ;;  %s1864_s26 = sphi %s1939_s26, %s2537_s26   ;;  %s1860_s25 = sphi %s1937_s25, %s2536_s25   ;;  %s1856_s24 = sphi %s1935_s24, %s2535_s24   ;;  %s1852_s23 = sphi %s1933_s23, %s2534_s23   ;;  %s1848_s22 = sphi %s1931_s22, %s2533_s22   ;;  %s1844_s21 = sphi %s1929_s21, %s2532_s21  }
  0x12   : > { %2506 = sst [smem:[#allocation13_spill]] %s1872_s28  ;;  %s1322_s9 = sadd.s32 4294967294, %s1884_s7  }
  0x13   : > { %p57_p0 = scmp.ne.s32.totalorder %s1860_s25, %s1856_s24  ;;  %p1985_p1 = scmp.eq.s32.totalorder %s1321_s8, 0 }
  0x14   : > { %p190_p2 = scmp.ne.s32.totalorder %s1852_s23, %s1848_s22  ;;  %p191_p3 = scmp.eq.s32.totalorder %s1321_s8, 3 }
  0x15   : > { %p1993_p4 = por %p1985_p1, %p57_p0  ;;  %p196_p5 = scmp.ne.s32.totalorder %s1848_s22, %s1844_s21 }
  0x16   : > { %p1999_p6 = por %p191_p3, %p190_p2  ;;  %p197_p7 = scmp.eq.s32.totalorder %s1322_s9, 3 }
  0x17   : > { %p1323_p8 = scmp.ge.s32.totalorder %s1884_s7, 1  ;;  %p204_p9 = scmp.lt.s32.totalorder %s1884_s7, 5 }
  0x18   : > { %s2509_s12 = scalar_select %p1999_p6, 1, 0 }
  0x19   : > { %p2005_p10 = por %p197_p7, %p196_p5  ;;  %p2009_p11 = pnand %p1323_p8, %p204_p9 }
  0x1a   : > { %2510 = sst [smem:[#allocation14_spill]] %s2509_s12  ;;  %s1886_s18 = smov [#allocation6]  }
  0x1b   : > { %s2511_s13 = scalar_select %p2005_p10, 1, 0 }
  0x1c   : > { %s2514_s4 = sld [smem:[#allocation21_spill]]  ;;  %p1521_p12 = pneg %p2009_p11 }
  0x1d   : > { %2512 = sst [smem:[#allocation15_spill]] %s2511_s13  ;;  %s223_s19 = sshll.u32 %s1886_s18, 4  ;;  %s224_s19 = int_to_ptr.vmem [resolvable:$true] %s223_s19 }
  0x1e   : > { %p1522_p13 = pnand %p1521_p12, %p1985_p1  ;;  %s2490_s20 = smov 128  }
  0x1f   : > { %s1888_s24 = smov 8   ;;  %s32_s8 = sadd.s32 1, %s1876_s29 }
  0x20   : > { %s35_s9 = sadd.s32 1, %s1880_s30  ;;  %p33_p0 = scmp.ge.s32.totalorder %s32_s8, 2 }
  0x21   : > { %s44_s15 = sadd.s32 1, %s1864_s26  ;;  %p51_p2 = scmp.ne.s32.totalorder %s1864_s26, %s1860_s25 }
  0x22   : > { %s221_s17 = sshll.u32 %s2514_s4, 4  ;;  %p52_p3 = scmp.eq.s32.totalorder %s1884_s7, 0  ;;  %s222_s17 = int_to_ptr.hbm [resolvable:$true] %s221_s17 }
  0x23   : > { %1524 = dma.hbm_to_vmem [thread:$0]  (!%p1522_p13), %s222_s17, 4096, %s224_s19, [#allocation7], %s2490_s20, %s2490_s20, %s1888_s24  }
  0x24   : > { %s2543_s8 = smov (%p33_p0, %s32_s8), 0  ;;  %s2545_s9 = smov (!%p33_p0, %s35_s9), %s1880_s30 }
  0x25   : > { %2515 = sst [smem:[#allocation16_spill]] %s2543_s8  ;;  %s40_s16 = ssub.s32 %s1876_s29, %s2543_s8 }
  0x26   : > { %p2033_p5 = por %p52_p3, %p51_p2  ;;  %p37_p7 = scmp.ge.s32.totalorder %s2545_s9, 2 }
  0x27   : > { %s180_s17 = sadd.s32 1, %s1852_s23  ;;  %p1534_p8 = scmp.lt.s32.totalorder %s1884_s7, 4 }
  0x28   : > { %s240_s19 = sand.u32 1, %s1864_s26   ;;  %s2547_s9 = smov (%p37_p7, %s2545_s9), 0 }
  0x29   : > { %2517 = sst [smem:[#allocation17_spill]] %s2547_s9  ;;  %s1326_s24 = sshll.u32 %s240_s19, 6 }
  0x2a   : > { %s39_s20 = ssub.s32 %s1880_s30, %s2547_s9  ;;  %s1439_s13 = sshll.u32 %s1880_s30, 5 }
  0x2b   : > { %s41_s4 = sor.u32 %s40_s16, %s39_s20  ;;  %p178_p9 = scmp.eq.s32.totalorder %s39_s20, 0 }
  0x2c   : > { %p42_p12 = scmp.eq.s32.totalorder %s41_s4, 0  ;;  %s249_s6 = sadd.s32 %s1876_s29, %s1439_s13 }
  0x2d   : > { %s2046_s8 = scalar_select %p178_p9, %s1852_s23, %s180_s17  }
  0x2e   : > { %s2049_s21 = scalar_select %p42_p12, %s1864_s26, %s44_s15  }
  0x2f   : > { %s244_s12 = scalar_lea.vmem [#allocation3], %s1326_s24  ;;  %s1329_s5 = sshll.u32 %s249_s6, 2 }
  0x30   : > { %s254_s28 = sshll.u32 %s244_s12, 4  ;;  %s251_s1 = scalar_lea.hbm %s2483_s0, %s1329_s5  ;;  %s255_s28 = int_to_ptr.vmem [resolvable:$true] %s254_s28 }
  0x31   : > { %p1526_p13 = pnand %p1534_p8, %p2033_p5  ;;  %s252_s16 = sshll.u32 %s251_s1, 4  ;;  %s253_s16 = int_to_ptr.hbm [resolvable:$true] %s252_s16 }
  0x32   : > { %s241_s4 = scalar_lea.sflag [#allocation4], %s240_s19  ;;  %s1889_s20 = smov 64  }
  0x33   : > { %s1890_s17 = smov 4   ;;  %s2518_s9 = smov 128  }
  0x34   : > { %1528 = dma.hbm_to_vmem [thread:$0]  (!%p1526_p13), %s253_s16, 1024, %s255_s28, %s241_s4, %s2518_s9, %s1889_s20, %s1890_s17  }
  0x35   : > { %275 = sbr.rel (%p2009_p11) target bundleno = 955 (0x3bb), region = 44  ;;  %s277_s6 = sand.u32 (!%p2009_p11), 1, %s1860_s25  }
  0x36   : > { %s1331_s12 = sshll.u32 (!%p2009_p11), %s277_s6, 6  ;;  %s278_s13 = scalar_lea.sflag (!%p2009_p11), [#allocation4], %s277_s6 }
  0x37   : > { %s2063_s2 = scalar_lea.vmem (!%p2009_p11), [#allocation3], %s1331_s12 }
  0x3a   : > { %1831 = dma.done.wait (%p1993_p4), %s278_s13, 1024  }
  0x3b   : > { %1833 = vsyncadd (%p1993_p4), %s278_s13, 4294966272 }
  0x3c   : > { %1835 = dma.done.wait (%p1985_p1), [#allocation7], 4096  }
  0x3d   : > { %1837 = vsyncadd (%p1985_p1), [#allocation7], 4294963200  ;;  %s318_s1 = sand.u32 1, %s1848_s22   ;;  %s1334_s3 = sshll.u32 %s1868_s27, 4 }
  0x3e   : > { %s1333_s5 = sshll.u32 %s318_s1, 7  ;;  %p323_p11 = scmp.lt.s32.totalorder %s1334_s3, 31 }
  0x3f   : > { %s2519_s11 = sld [smem:[#allocation18_spill]]  ;;  %s2082_s18 = scalar_lea.vmem [#allocation8], %s1333_s5 }
  0x40   : > { %s2549_s3 = smov (!%p323_p11, %s1334_s3), 31  ;;  %p1336_p4 = scmp.ne.s32.totalorder %s1868_s27, 0 }
  0x41   : > { %s1335_s28 = sshll.u32 %s2549_s3, 2 }
  0x42   : > { %332 = sbr.rel (%p1336_p4) target bundleno = 88 (0x58), region = 56 }
  0x45   : > { %s2080_s15 = scalar_lea.vmem %s2519_s11, %s1335_s28 }
  0x47   : > { %vm333_vm0 = vcmask 261120   ;;  %v1891_v0 = vmov 0.0  }
  0x48   : > { %334 = vst.msk [vmem:[#allocation2] sm:$0xff] %vm333_vm0, %v1891_v0 }
  0x49   : > { %335 = vst.msk [vmem:[#allocation2 + $0x8] sm:$0xff] %vm333_vm0, %v1891_v0 }
  0x4a   : > { %336 = vst.msk [vmem:[#allocation2 + $0x10] sm:$0xff] %vm333_vm0, %v1891_v0 }
  0x4b   : > { %337 = vst.msk [vmem:[#allocation2 + $0x18] sm:$0xff] %vm333_vm0, %v1891_v0 }
  0x4c   : > { %338 = vst.msk [vmem:[#allocation2 + $0x20] sm:$0xff] %vm333_vm0, %v1891_v0 }
  0x4d   : > { %339 = vst.msk [vmem:[#allocation2 + $0x28] sm:$0xff] %vm333_vm0, %v1891_v0 }
  0x4e   : > { %340 = vst.msk [vmem:[#allocation2 + $0x30] sm:$0xff] %vm333_vm0, %v1891_v0 }
  0x4f   : > { %341 = vst.msk [vmem:[#allocation2 + $0x38] sm:$0xff] %vm333_vm0, %v1891_v0 }
  0x50   : > { %342 = vst.msk [vmem:[#allocation2 + $0x40] sm:$0xff] %vm333_vm0, %v1891_v0 }
  0x51   : > { %343 = vst.msk [vmem:[#allocation2 + $0x48] sm:$0xff] %vm333_vm0, %v1891_v0 }
  0x52   : > { %344 = vst.msk [vmem:[#allocation2 + $0x50] sm:$0xff] %vm333_vm0, %v1891_v0 }
  0x53   : > { %345 = vst.msk [vmem:[#allocation2 + $0x58] sm:$0xff] %vm333_vm0, %v1891_v0 }
  0x54   : > { %346 = vst.msk [vmem:[#allocation2 + $0x60] sm:$0xff] %vm333_vm0, %v1891_v0 }
  0x55   : > { %347 = vst.msk [vmem:[#allocation2 + $0x68] sm:$0xff] %vm333_vm0, %v1891_v0 }
  0x56   : > { %348 = vst.msk [vmem:[#allocation2 + $0x70] sm:$0xff] %vm333_vm0, %v1891_v0 }
  0x57   : > { %349 = vst.msk [vmem:[#allocation2 + $0x78] sm:$0xff] %vm333_vm0, %v1891_v0 }
  0x58 PF: > { %v1455_v1 = vld [vmem:[%s2080_s15 + $0x38] sm:$0xff]  ;;  %v1454_v2 = vld [vmem:[%s2080_s15 + $0x30] sm:$0xff]  ;;  %v1453_v3 = vld [vmem:[%s2080_s15 + $0x28] sm:$0xff]  ;;  %vm559_vm1 = vcmask 261120   ;;  %p1401_p1 = scmp.ne.s32.totalorder %s1868_s27, 1 }
  0x59   : > { %494 = vmatpush.bf16.msra.mxu0 %v1455_v1  ;;  %1457 = vmatpush.bf16.msra.mxu1 %v1455_v1  ;;  %v1452_v4 = vld [vmem:[%s2080_s15 + $0x20] sm:$0xff]  ;;  %v1451_v5 = vld [vmem:[%s2080_s15 + $0x18] sm:$0xff]  ;;  %v1450_v6 = vld [vmem:[%s2080_s15 + $0x10] sm:$0xff]  ;;  %s2520_s24 = sld [smem:[#allocation19_spill]] (!%p1401_p1) }
  0x5a   : > { %1458 = vmatpush.bf16.msra.mxu2 %v1455_v1  ;;  %1459 = vmatpush.bf16.msra.mxu3 %v1455_v1  ;;  %v1449_v7 = vld [vmem:[%s2080_s15 + $0x8] sm:$0xff]  ;;  %v1448_v8 = vld [vmem:[%s2080_s15] sm:$0xff]  ;;  %v1442_v10 = vld [vmem:[%s2063_s2 + $0x10] sm:$0xff]  ;;  %s2522_s19 = sld [smem:[#allocation20_spill]] (!%p1401_p1) }
  0x5b   : > { %v1440_v9 = vld [vmem:[%s2063_s2] sm:$0xff]  ;;  %v1446_v12 = vld [vmem:[%s2063_s2 + $0x30] sm:$0xff]  ;;  %v1441_v13 = vld [vmem:[%s2063_s2 + $0x8] sm:$0xff]  ;;  %s2523_s20 = sld [smem:[#allocation22_spill]] (!%p1401_p1) }
  0x5c   : > { %v1444_v11 = vld [vmem:[%s2063_s2 + $0x20] sm:$0xff]  ;;  %v1443_v14 = vld [vmem:[%s2063_s2 + $0x18] sm:$0xff]  ;;  %v1445_v15 = vld [vmem:[%s2063_s2 + $0x28] sm:$0xff] }
  0x5d   : > { %495 = vmatpush.bf16.msra.mxu0 %v1454_v2  ;;  %1460 = vmatpush.bf16.msra.mxu1 %v1454_v2  ;;  %v1447_v16 = vld [vmem:[%s2063_s2 + $0x38] sm:$0xff]  ;;  %v350_v17 = vld [vmem:[#allocation2] sm:$0xff]  ;;  %v351_v25 = vld [vmem:[#allocation2 + $0x8] sm:$0xff] }
  0x5e   : > { %1461 = vmatpush.bf16.msra.mxu2 %v1454_v2  ;;  %1462 = vmatpush.bf16.msra.mxu3 %v1454_v2  ;;  %v354_v18 = vld [vmem:[#allocation2 + $0x20] sm:$0xff]  ;;  %v355_v26 = vld [vmem:[#allocation2 + $0x28] sm:$0xff]  ;;  %v352_v37 = vld [vmem:[#allocation2 + $0x10] sm:$0xff] }
  0x5f   : > { %v358_v23 = vld [vmem:[#allocation2 + $0x40] sm:$0xff]  ;;  %v359_v35 = vld [vmem:[#allocation2 + $0x48] sm:$0xff]  ;;  %v356_v38 = vld [vmem:[#allocation2 + $0x30] sm:$0xff]  ;;  %s2521_s16 = smov (!%p1401_p1), %s2520_s24 }
  0x60   : > { %v362_v24 = vld [vmem:[#allocation2 + $0x60] sm:$0xff]  ;;  %v363_v36 = vld [vmem:[#allocation2 + $0x68] sm:$0xff]  ;;  %v360_v47 = vld [vmem:[#allocation2 + $0x50] sm:$0xff] }
  0x61   : > { %496 = vmatpush.bf16.msra.mxu0 %v1453_v3  ;;  %1463 = vmatpush.bf16.msra.mxu1 %v1453_v3  ;;  %v364_v48 = vld [vmem:[#allocation2 + $0x70] sm:$0xff]  ;;  %v353_v49 = vld [vmem:[#allocation2 + $0x18] sm:$0xff] }
  0x62   : > { %1464 = vmatpush.bf16.msra.mxu2 %v1453_v3  ;;  %1465 = vmatpush.bf16.msra.mxu3 %v1453_v3  ;;  %v357_v50 = vld [vmem:[#allocation2 + $0x38] sm:$0xff] }
  0x63   : > { %v361_v59 = vld [vmem:[#allocation2 + $0x58] sm:$0xff] }
  0x64   : > { %v365_v60 = vld [vmem:[#allocation2 + $0x78] sm:$0xff] }
  0x65   : > { %497 = vmatpush.bf16.msra.mxu0 %v1452_v4  ;;  %1466 = vmatpush.bf16.msra.mxu1 %v1452_v4 }
  0x66   : > { %1467 = vmatpush.bf16.msra.mxu2 %v1452_v4  ;;  %1468 = vmatpush.bf16.msra.mxu3 %v1452_v4 }
  0x69   : > { %498 = vmatpush.bf16.msra.mxu0 %v1451_v5  ;;  %1469 = vmatpush.bf16.msra.mxu1 %v1451_v5 }
  0x6a   : > { %1470 = vmatpush.bf16.msra.mxu2 %v1451_v5  ;;  %1471 = vmatpush.bf16.msra.mxu3 %v1451_v5 }
  0x6d   : > { %499 = vmatpush.bf16.msra.mxu0 %v1450_v6  ;;  %1472 = vmatpush.bf16.msra.mxu1 %v1450_v6 }
  0x6e   : > { %1473 = vmatpush.bf16.msra.mxu2 %v1450_v6  ;;  %1474 = vmatpush.bf16.msra.mxu3 %v1450_v6 }
  0x71   : > { %500 = vmatpush.bf16.msra.mxu0 %v1449_v7  ;;  %1475 = vmatpush.bf16.msra.mxu1 %v1449_v7 }
  0x72   : > { %1476 = vmatpush.bf16.msra.mxu2 %v1449_v7  ;;  %1477 = vmatpush.bf16.msra.mxu3 %v1449_v7 }
  0x75   : > { %501 = vmatpush.bf16.msra.mxu0 %v1448_v8  ;;  %1478 = vmatpush.bf16.msra.mxu1 %v1448_v8 }
  0x76   : > { %1479 = vmatpush.bf16.msra.mxu2 %v1448_v8  ;;  %1480 = vmatpush.bf16.msra.mxu3 %v1448_v8 }
  0x78   : > { %502 = vmatmul.bf16.vlgmr.msra.gmra.mxu0 %v1440_v9  ;;  %512 = vmatmul.bf16.vlgmr.msra.gmra.mxu1 %v1442_v10 }
  0x79   : > { %522 = vmatmul.bf16.vlgmr.msra.gmra.mxu2 %v1444_v11  ;;  %532 = vmatmul.bf16.vlgmr.msra.gmra.mxu3 %v1446_v12 }
  0x88   : > { %507 = vmatmul.bf16.gmra.mxu0 %v1441_v13  ;;  %517 = vmatmul.bf16.gmra.mxu1 %v1443_v14 }
  0x89   : > { %527 = vmatmul.bf16.gmra.mxu2 %v1445_v15  ;;  %537 = vmatmul.bf16.gmra.mxu3 %v1447_v16 }
  0xf5   : > { %v503_v19 = vpop.f32.mrf.mxu0  ;;  %v513_v20 = vpop.f32.mrf.mxu1 }
  0xf6   : > { %v543_v21 = vadd.f32 %v503_v19, %v350_v17  ;;  %v547_v22 = vadd.f32 %v513_v20, %v354_v18 }
  0xf8   : > { %560 = vst.msk [vmem:[#allocation2] sm:$0xff] %vm559_vm1, %v543_v21 }
  0xf9   : > { %564 = vst.msk [vmem:[#allocation2 + $0x20] sm:$0xff] %vm559_vm1, %v547_v22 }
  0xfc   : > { %v523_v27 = vpop.f32.mrf.mxu2  ;;  %v533_v28 = vpop.f32.mrf.mxu3 }
  0xfd   : > { %v551_v29 = vadd.f32 %v523_v27, %v358_v23  ;;  %v555_v30 = vadd.f32 %v533_v28, %v362_v24  ;;  %v505_v31 = vpop.f32.mrf.mxu0  ;;  %v515_v32 = vpop.f32.mrf.mxu1 }
  0xfe   : > { %v544_v33 = vadd.f32 %v505_v31, %v351_v25  ;;  %v548_v34 = vadd.f32 %v515_v32, %v355_v26 }
  0xff   : > { %568 = vst.msk [vmem:[#allocation2 + $0x40] sm:$0xff] %vm559_vm1, %v551_v29 }
 0x100   : > { %572 = vst.msk [vmem:[#allocation2 + $0x60] sm:$0xff] %vm559_vm1, %v555_v30 }
 0x101   : > { %561 = vst.msk [vmem:[#allocation2 + $0x8] sm:$0xff] %vm559_vm1, %v544_v33 }
 0x102   : > { %565 = vst.msk [vmem:[#allocation2 + $0x28] sm:$0xff] %vm559_vm1, %v548_v34 }
 0x104   : > { %v525_v39 = vpop.f32.mrf.mxu2  ;;  %v535_v40 = vpop.f32.mrf.mxu3 }
 0x105   : > { %v552_v41 = vadd.f32 %v525_v39, %v359_v35  ;;  %v556_v42 = vadd.f32 %v535_v40, %v363_v36  ;;  %v508_v43 = vpop.f32.mrf.mxu0  ;;  %v518_v44 = vpop.f32.mrf.mxu1 }
 0x106   : > { %v545_v45 = vadd.f32 %v508_v43, %v352_v37  ;;  %v549_v46 = vadd.f32 %v518_v44, %v356_v38 }
 0x107   : > { %569 = vst.msk [vmem:[#allocation2 + $0x48] sm:$0xff] %vm559_vm1, %v552_v41 }
 0x108   : > { %573 = vst.msk [vmem:[#allocation2 + $0x68] sm:$0xff] %vm559_vm1, %v556_v42 }
 0x109   : > { %562 = vst.msk [vmem:[#allocation2 + $0x10] sm:$0xff] %vm559_vm1, %v545_v45 }
 0x10a   : > { %566 = vst.msk [vmem:[#allocation2 + $0x30] sm:$0xff] %vm559_vm1, %v549_v46 }
 0x10c   : > { %v528_v51 = vpop.f32.mrf.mxu2  ;;  %v538_v52 = vpop.f32.mrf.mxu3 }
 0x10d   : > { %v553_v53 = vadd.f32 %v528_v51, %v360_v47  ;;  %v557_v54 = vadd.f32 %v538_v52, %v364_v48  ;;  %v510_v55 = vpop.f32.mrf.mxu0  ;;  %v520_v56 = vpop.f32.mrf.mxu1 }
 0x10e   : > { %v546_v57 = vadd.f32 %v510_v55, %v353_v49  ;;  %v550_v58 = vadd.f32 %v520_v56, %v357_v50 }
 0x10f   : > { %570 = vst.msk [vmem:[#allocation2 + $0x50] sm:$0xff] %vm559_vm1, %v553_v53 }
 0x110   : > { %574 = vst.msk [vmem:[#allocation2 + $0x70] sm:$0xff] %vm559_vm1, %v557_v54 }
 0x111   : > { %563 = vst.msk [vmem:[#allocation2 + $0x18] sm:$0xff] %vm559_vm1, %v546_v57 }
 0x112   : > { %567 = vst.msk [vmem:[#allocation2 + $0x38] sm:$0xff] %vm559_vm1, %v550_v58 }
 0x114   : > { %v530_v61 = vpop.f32.mrf.mxu2  ;;  %v540_v62 = vpop.f32.mrf.mxu3  ;;  %579 = sbr.rel (%p1401_p1) target bundleno = 933 (0x3a5), region = 60 }
 0x115   : > { %v554_v63 = vadd.f32 %v530_v61, %v361_v59  ;;  %v558_v0 = vadd.f32 %v540_v62, %v365_v60 }
 0x117   : > { %571 = vst.msk [vmem:[#allocation2 + $0x58] sm:$0xff] %vm559_vm1, %v554_v63 }
 0x118   : > { %575 = vst.msk [vmem:[#allocation2 + $0x78] sm:$0xff] %vm559_vm1, %v558_v0 }
 0x119   : > { %v602_v1 = vld [vmem:[%s2520_s24 + $0x30] sm:$0xff]  ;;  %v600_v2 = vld [vmem:[%s2521_s16 + $0x20] sm:$0xff]  ;;  %v603_v3 = vld [vmem:[%s2521_s16 + $0x38] sm:$0xff] }
 0x11a   : > { %670 = vmatpush.msra.mxu0 %v602_v1  ;;  %735 = vmatpush.msra.mxu1 %v603_v3  ;;  %v601_v4 = vld [vmem:[%s2521_s16 + $0x28] sm:$0xff]  ;;  %v598_v5 = vld [vmem:[%s2521_s16 + $0x10] sm:$0xff]  ;;  %v599_v6 = vld [vmem:[%s2521_s16 + $0x18] sm:$0xff] }
 0x11b   : > { %v596_v7 = vld [vmem:[%s2521_s16] sm:$0xff]  ;;  %v597_v8 = vld [vmem:[%s2521_s16 + $0x8] sm:$0xff]  ;;  %v582_v11 = vld [vmem:[#allocation2 + $0x10] sm:$0xff] }
 0x11c   : > { %671 = vmatpush.msra.mxu0 %v600_v2  ;;  %736 = vmatpush.msra.mxu1 %v601_v4  ;;  %v580_v9 = vld [vmem:[#allocation2] sm:$0xff]  ;;  %v581_v10 = vld [vmem:[#allocation2 + $0x8] sm:$0xff]  ;;  %v583_v12 = vld [vmem:[#allocation2 + $0x18] sm:$0xff] }
 0x11d   : > { %v584_v13 = vld [vmem:[#allocation2 + $0x20] sm:$0xff]  ;;  %v585_v14 = vld [vmem:[#allocation2 + $0x28] sm:$0xff]  ;;  %v586_v15 = vld [vmem:[#allocation2 + $0x30] sm:$0xff] }
 0x11e   : > { %672 = vmatpush.msra.mxu0 %v598_v5  ;;  %737 = vmatpush.msra.mxu1 %v599_v6  ;;  %v587_v16 = vld [vmem:[#allocation2 + $0x38] sm:$0xff]  ;;  %v588_v19 = vld [vmem:[#allocation2 + $0x40] sm:$0xff]  ;;  %v834_v20 = vld [vmem:[#allocation6 + $0x70] sm:$0xff] }
 0x11f   : > { %v835_v17 = vld [vmem:[#allocation6 + $0x78] sm:$0xff]  ;;  %v850_v21 = vld [vmem:[#allocation6 + $0xf0] sm:$0xff]  ;;  %v833_v22 = vld [vmem:[#allocation6 + $0x68] sm:$0xff] }
 0x120   : > { %673 = vmatpush.msra.mxu0 %v596_v7  ;;  %738 = vmatpush.msra.mxu1 %v597_v8  ;;  %v851_v18 = vld [vmem:[#allocation6 + $0xf8] sm:$0xff]  ;;  %v589_v23 = vld [vmem:[#allocation2 + $0x48] sm:$0xff]  ;;  %v832_v24 = vld [vmem:[#allocation6 + $0x60] sm:$0xff] }
 0x121   : > { %1402 = vmatmul.msk.f32.vlgmr.msra.gmra.mxu0 %vm559_vm1, %v580_v9  ;;  %1418 = vmatmul.msk.f32.vlgmr.msra.gmra.mxu1 %vm559_vm1, %v580_v9  ;;  %v849_v25 = vld [vmem:[#allocation6 + $0xe8] sm:$0xff]  ;;  %v831_v26 = vld [vmem:[#allocation6 + $0x58] sm:$0xff]  ;;  %v848_v27 = vld [vmem:[#allocation6 + $0xe0] sm:$0xff] }
 0x122   : > { %856 = vmatpush.msrb.mxu0 %v835_v17  ;;  %921 = vmatpush.msrb.mxu1 %v851_v18  ;;  %v830_v28 = vld [vmem:[#allocation6 + $0x50] sm:$0xff]  ;;  %v847_v29 = vld [vmem:[#allocation6 + $0xd8] sm:$0xff]  ;;  %v829_v30 = vld [vmem:[#allocation6 + $0x48] sm:$0xff] }
 0x123   : > { %1481 = vmatpush.msra.mxu2 %v835_v17  ;;  %1497 = vmatpush.msra.mxu3 %v851_v18  ;;  %v846_v31 = vld [vmem:[#allocation6 + $0xd0] sm:$0xff]  ;;  %v828_v33 = vld [vmem:[#allocation6 + $0x40] sm:$0xff]  ;;  %v845_v34 = vld [vmem:[#allocation6 + $0xc8] sm:$0xff] }
 0x124   : > { %857 = vmatpush.msrb.mxu0 %v834_v20  ;;  %922 = vmatpush.msrb.mxu1 %v850_v21  ;;  %v590_v32 = vld [vmem:[#allocation2 + $0x50] sm:$0xff]  ;;  %v827_v35 = vld [vmem:[#allocation6 + $0x38] sm:$0xff]  ;;  %v844_v36 = vld [vmem:[#allocation6 + $0xc0] sm:$0xff] }
 0x125   : > { %1482 = vmatpush.msra.mxu2 %v834_v20  ;;  %1498 = vmatpush.msra.mxu3 %v850_v21  ;;  %v826_v37 = vld [vmem:[#allocation6 + $0x30] sm:$0xff]  ;;  %v843_v38 = vld [vmem:[#allocation6 + $0xb8] sm:$0xff]  ;;  %v825_v39 = vld [vmem:[#allocation6 + $0x28] sm:$0xff] }
 0x126   : > { %858 = vmatpush.msrb.mxu0 %v833_v22  ;;  %923 = vmatpush.msrb.mxu1 %v849_v25  ;;  %v842_v40 = vld [vmem:[#allocation6 + $0xb0] sm:$0xff]  ;;  %v591_v41 = vld [vmem:[#allocation2 + $0x58] sm:$0xff]  ;;  %v824_v42 = vld [vmem:[#allocation6 + $0x20] sm:$0xff] }
 0x127   : > { %1483 = vmatpush.msra.mxu2 %v833_v22  ;;  %1499 = vmatpush.msra.mxu3 %v849_v25  ;;  %v841_v43 = vld [vmem:[#allocation6 + $0xa8] sm:$0xff]  ;;  %v823_v44 = vld [vmem:[#allocation6 + $0x18] sm:$0xff]  ;;  %v840_v45 = vld [vmem:[#allocation6 + $0xa0] sm:$0xff] }
 0x128   : > { %859 = vmatpush.msrb.mxu0 %v832_v24  ;;  %924 = vmatpush.msrb.mxu1 %v848_v27  ;;  %v822_v46 = vld [vmem:[#allocation6 + $0x10] sm:$0xff]  ;;  %v839_v47 = vld [vmem:[#allocation6 + $0x98] sm:$0xff]  ;;  %v592_v48 = vld [vmem:[#allocation2 + $0x60] sm:$0xff] }
 0x129   : > { %1403 = vmatmul.msk.f32.gmra.mxu0 %vm559_vm1, %v581_v10  ;;  %1419 = vmatmul.msk.f32.gmra.mxu1 %vm559_vm1, %v581_v10  ;;  %v821_v49 = vld [vmem:[#allocation6 + $0x8] sm:$0xff]  ;;  %v838_v50 = vld [vmem:[#allocation6 + $0x90] sm:$0xff]  ;;  %v820_v51 = vld [vmem:[#allocation6] sm:$0xff] }
 0x12a   : > { %1484 = vmatpush.msra.mxu2 %v832_v24  ;;  %860 = vmatpush.msrb.mxu0 %v831_v26  ;;  %v837_v52 = vld [vmem:[#allocation6 + $0x88] sm:$0xff]  ;;  %v836_v53 = vld [vmem:[#allocation6 + $0x80] sm:$0xff]  ;;  %v594_v55 = vld [vmem:[#allocation2 + $0x70] sm:$0xff] }
 0x12b   : > { %1500 = vmatpush.msra.mxu3 %v848_v27  ;;  %925 = vmatpush.msrb.mxu1 %v847_v29  ;;  %v593_v54 = vld [vmem:[#allocation2 + $0x68] sm:$0xff]  ;;  %v595_v56 = vld [vmem:[#allocation2 + $0x78] sm:$0xff]  ;;  %v604_v57 = vld [vmem:[%s2522_s19] sm:$0x3] }
 0x12c   : > { %1485 = vmatpush.msra.mxu2 %v831_v26  ;;  %861 = vmatpush.msrb.mxu0 %v830_v28  ;;  %v2193_v58 = vperm.slane %v604_v57, 0  ;;  %v2195_v59 = vperm.slane %v604_v57, 1 }
 0x12d   : > { %1501 = vmatpush.msra.mxu3 %v847_v29  ;;  %926 = vmatpush.msrb.mxu1 %v846_v31 }
 0x12e   : > { %1486 = vmatpush.msra.mxu2 %v830_v28  ;;  %862 = vmatpush.msrb.mxu0 %v829_v30 }
 0x12f   : > { %927 = vmatpush.msrb.mxu1 %v845_v34  ;;  %1502 = vmatpush.msra.mxu3 %v846_v31 }
 0x130   : > { %863 = vmatpush.msrb.mxu0 %v828_v33  ;;  %1487 = vmatpush.msra.mxu2 %v829_v30 }
 0x131   : > { %1404 = vmatmul.msk.f32.gmra.mxu0 %vm559_vm1, %v582_v11  ;;  %1420 = vmatmul.msk.f32.gmra.mxu1 %vm559_vm1, %v582_v11 }
 0x132   : > { %864 = vmatpush.msrb.mxu0 %v827_v35  ;;  %928 = vmatpush.msrb.mxu1 %v844_v36 }
 0x133   : > { %1488 = vmatpush.msra.mxu2 %v828_v33  ;;  %1503 = vmatpush.msra.mxu3 %v845_v34 }
 0x134   : > { %865 = vmatpush.msrb.mxu0 %v826_v37  ;;  %929 = vmatpush.msrb.mxu1 %v843_v38 }
 0x135   : > { %1489 = vmatpush.msra.mxu2 %v827_v35  ;;  %1504 = vmatpush.msra.mxu3 %v844_v36 }
 0x136   : > { %866 = vmatpush.msrb.mxu0 %v825_v39  ;;  %930 = vmatpush.msrb.mxu1 %v842_v40 }
 0x137   : > { %1490 = vmatpush.msra.mxu2 %v826_v37  ;;  %1505 = vmatpush.msra.mxu3 %v843_v38 }
 0x138   : > { %867 = vmatpush.msrb.mxu0 %v824_v42  ;;  %931 = vmatpush.msrb.mxu1 %v841_v43 }
 0x139   : > { %1405 = vmatmul.msk.f32.gmra.mxu0 %vm559_vm1, %v583_v12  ;;  %1421 = vmatmul.msk.f32.gmra.mxu1 %vm559_vm1, %v583_v12 }
 0x13a   : > { %868 = vmatpush.msrb.mxu0 %v823_v44  ;;  %932 = vmatpush.msrb.mxu1 %v840_v45 }
 0x13b   : > { %1491 = vmatpush.msra.mxu2 %v825_v39  ;;  %1506 = vmatpush.msra.mxu3 %v842_v40 }
 0x13c   : > { %869 = vmatpush.msrb.mxu0 %v822_v46  ;;  %933 = vmatpush.msrb.mxu1 %v839_v47 }
 0x13d   : > { %1492 = vmatpush.msra.mxu2 %v824_v42  ;;  %1507 = vmatpush.msra.mxu3 %v841_v43 }
 0x13e   : > { %870 = vmatpush.msrb.mxu0 %v821_v49  ;;  %934 = vmatpush.msrb.mxu1 %v838_v50 }
 0x13f   : > { %1493 = vmatpush.msra.mxu2 %v823_v44  ;;  %1508 = vmatpush.msra.mxu3 %v840_v45 }
 0x140   : > { %871 = vmatpush.msrb.mxu0 %v820_v51  ;;  %935 = vmatpush.msrb.mxu1 %v837_v52 }
 0x141   : > { %1406 = vmatmul.msk.f32.gmra.mxu0 %vm559_vm1, %v584_v13  ;;  %1422 = vmatmul.msk.f32.gmra.mxu1 %vm559_vm1, %v584_v13 }
 0x142   : > { %936 = vmatpush.msrb.mxu1 %v836_v53  ;;  %1494 = vmatpush.msra.mxu2 %v822_v46 }
 0x143   : > { %1509 = vmatpush.msra.mxu3 %v839_v47 }
 0x144   : > { %1495 = vmatpush.msra.mxu2 %v821_v49 }
 0x145   : > { %1510 = vmatpush.msra.mxu3 %v838_v50 }
 0x146   : > { %1496 = vmatpush.msra.mxu2 %v820_v51 }
 0x147   : > { %1511 = vmatpush.msra.mxu3 %v837_v52 }
 0x149   : > { %1407 = vmatmul.msk.f32.gmra.mxu0 %vm559_vm1, %v585_v14  ;;  %1423 = vmatmul.msk.f32.gmra.mxu1 %vm559_vm1, %v585_v14 }
 0x14a   : > { %1512 = vmatpush.msra.mxu3 %v836_v53 }
 0x151   : > { %1408 = vmatmul.msk.f32.gmra.mxu0 %vm559_vm1, %v586_v15  ;;  %1424 = vmatmul.msk.f32.gmra.mxu1 %vm559_vm1, %v586_v15 }
 0x159   : > { %1409 = vmatmul.msk.f32.gmra.mxu0 %vm559_vm1, %v587_v16  ;;  %1425 = vmatmul.msk.f32.gmra.mxu1 %vm559_vm1, %v587_v16 }
 0x161   : > { %1410 = vmatmul.msk.f32.gmra.mxu0 %vm559_vm1, %v588_v19  ;;  %1426 = vmatmul.msk.f32.gmra.mxu1 %vm559_vm1, %v588_v19 }
 0x169   : > { %1411 = vmatmul.msk.f32.gmra.mxu0 %vm559_vm1, %v589_v23  ;;  %1427 = vmatmul.msk.f32.gmra.mxu1 %vm559_vm1, %v589_v23 }
 0x171   : > { %1412 = vmatmul.msk.f32.gmra.mxu0 %vm559_vm1, %v590_v32  ;;  %1428 = vmatmul.msk.f32.gmra.mxu1 %vm559_vm1, %v590_v32 }
 0x179   : > { %1413 = vmatmul.msk.f32.gmra.mxu0 %vm559_vm1, %v591_v41  ;;  %1429 = vmatmul.msk.f32.gmra.mxu1 %vm559_vm1, %v591_v41 }
 0x181   : > { %1414 = vmatmul.msk.f32.gmra.mxu0 %vm559_vm1, %v592_v48  ;;  %1430 = vmatmul.msk.f32.gmra.mxu1 %vm559_vm1, %v592_v48 }
 0x189   : > { %1415 = vmatmul.msk.f32.gmra.mxu0 %vm559_vm1, %v593_v54  ;;  %1431 = vmatmul.msk.f32.gmra.mxu1 %vm559_vm1, %v593_v54 }
 0x191   : > { %1416 = vmatmul.msk.f32.gmra.mxu0 %vm559_vm1, %v594_v55  ;;  %1432 = vmatmul.msk.f32.gmra.mxu1 %vm559_vm1, %v594_v55 }
 0x199   : > { %1417 = vmatmul.msk.f32.gmra.mxu0 %vm559_vm1, %v595_v56  ;;  %1433 = vmatmul.msk.f32.gmra.mxu1 %vm559_vm1, %v595_v56 }
 0x19e   : > { %v675_v60 = vpop.f32.mrf.mxu0  ;;  %v740_v61 = vpop.f32.mrf.mxu1 }
 0x19f   : > { %v676_v62 = vadd.f32 %v675_v60, %v2193_v58  ;;  %v741_v63 = vadd.f32 %v740_v61, %v2195_v59 }
 0x1a1   : > { %v788_v0 = vmax.f32 %v676_v62, 0.0  ;;  %v789_v1 = vmax.f32 %v741_v63, 0.0 }
 0x1a3   : > { %872 = vmatmul.f32.vlgmr.msrb.gmra.mxu0 %v788_v0  ;;  %937 = vmatmul.f32.vlgmr.msrb.gmra.mxu1 %v789_v1 }
 0x1a6   : > { %v678_v2 = vpop.f32.mrf.mxu0  ;;  %v743_v3 = vpop.f32.mrf.mxu1 }
 0x1a7   : > { %v679_v4 = vadd.f32 %v678_v2, %v2193_v58  ;;  %v744_v5 = vadd.f32 %v743_v3, %v2195_v59 }
 0x1a9   : > { %v790_v6 = vmax.f32 %v679_v4, 0.0  ;;  %v791_v7 = vmax.f32 %v744_v5, 0.0 }
 0x1ab   : > { %875 = vmatmul.f32.vlgmr.msra.gmra.mxu2 %v790_v6  ;;  %940 = vmatmul.f32.vlgmr.msra.gmra.mxu3 %v791_v7 }
 0x1ae   : > { %v681_v8 = vpop.f32.mrf.mxu0  ;;  %v746_v9 = vpop.f32.mrf.mxu1 }
 0x1af   : > { %v682_v10 = vadd.f32 %v681_v8, %v2193_v58  ;;  %v747_v11 = vadd.f32 %v746_v9, %v2195_v59 }
 0x1b1   : > { %v792_v12 = vmax.f32 %v682_v10, 0.0  ;;  %v793_v13 = vmax.f32 %v747_v11, 0.0 }
 0x1b3   : > { %878 = vmatmul.f32.gmra.mxu2 %v792_v12  ;;  %943 = vmatmul.f32.gmra.mxu3 %v793_v13 }
 0x1b6   : > { %v684_v14 = vpop.f32.mrf.mxu0  ;;  %v749_v15 = vpop.f32.mrf.mxu1 }
 0x1b7   : > { %v685_v16 = vadd.f32 %v684_v14, %v2193_v58  ;;  %v750_v17 = vadd.f32 %v749_v15, %v2195_v59 }
 0x1b9   : > { %v794_v18 = vmax.f32 %v685_v16, 0.0  ;;  %v795_v19 = vmax.f32 %v750_v17, 0.0 }
 0x1bb   : > { %881 = vmatmul.f32.gmra.mxu2 %v794_v18  ;;  %946 = vmatmul.f32.gmra.mxu3 %v795_v19 }
 0x1be   : > { %v687_v20 = vpop.f32.mrf.mxu0  ;;  %v752_v21 = vpop.f32.mrf.mxu1 }
 0x1bf   : > { %v688_v22 = vadd.f32 %v687_v20, %v2193_v58  ;;  %v753_v23 = vadd.f32 %v752_v21, %v2195_v59 }
 0x1c1   : > { %v796_v24 = vmax.f32 %v688_v22, 0.0  ;;  %v797_v25 = vmax.f32 %v753_v23, 0.0 }
 0x1c3   : > { %884 = vmatmul.f32.gmra.mxu2 %v796_v24  ;;  %949 = vmatmul.f32.gmra.mxu3 %v797_v25 }
 0x1c6   : > { %v690_v26 = vpop.f32.mrf.mxu0  ;;  %v755_v27 = vpop.f32.mrf.mxu1 }
 0x1c7   : > { %v691_v28 = vadd.f32 %v690_v26, %v2193_v58  ;;  %v756_v29 = vadd.f32 %v755_v27, %v2195_v59 }
 0x1c9   : > { %v798_v30 = vmax.f32 %v691_v28, 0.0  ;;  %v799_v31 = vmax.f32 %v756_v29, 0.0 }
 0x1cb   : > { %887 = vmatmul.f32.gmra.mxu2 %v798_v30  ;;  %952 = vmatmul.f32.gmra.mxu3 %v799_v31  ;;  %v1002_v30 = vlaneseq  ;;  %v2232_v31 = vld [vmem:[%s2523_s20] ss:$0 sm:$0xff] }
 0x1ce   : > { %v693_v32 = vpop.f32.mrf.mxu0  ;;  %v758_v33 = vpop.f32.mrf.mxu1 }
 0x1cf   : > { %v694_v34 = vadd.f32 %v693_v32, %v2193_v58  ;;  %v759_v35 = vadd.f32 %v758_v33, %v2195_v59 }
 0x1d1   : > { %v800_v36 = vmax.f32 %v694_v34, 0.0  ;;  %v801_v37 = vmax.f32 %v759_v35, 0.0  ;;  %v2234_v34 = vand.u32 127, %v1002_v30 }
 0x1d3   : > { %890 = vmatmul.f32.gmra.mxu2 %v800_v36  ;;  %955 = vmatmul.f32.gmra.mxu3 %v801_v37  ;;  %vm1004_vm2 = vcmp.lt.s32.totalorder %v2234_v34, 64 }
 0x1d6   : > { %v696_v38 = vpop.f32.mrf.mxu0  ;;  %v761_v39 = vpop.f32.mrf.mxu1 }
 0x1d7   : > { %v697_v40 = vadd.f32 %v696_v38, %v2193_v58  ;;  %v762_v41 = vadd.f32 %v761_v39, %v2195_v59 }
 0x1d9   : > { %v802_v42 = vmax.f32 %v697_v40, 0.0  ;;  %v803_v43 = vmax.f32 %v762_v41, 0.0 }
 0x1db   : > { %893 = vmatmul.f32.gmra.mxu2 %v802_v42  ;;  %958 = vmatmul.f32.gmra.mxu3 %v803_v43 }
 0x1de   : > { %v699_v44 = vpop.f32.mrf.mxu0  ;;  %v764_v45 = vpop.f32.mrf.mxu1 }
 0x1df   : > { %v700_v46 = vadd.f32 %v699_v44, %v2193_v58  ;;  %v765_v47 = vadd.f32 %v764_v45, %v2195_v59 }
 0x1e1   : > { %v804_v48 = vmax.f32 %v700_v46, 0.0  ;;  %v805_v49 = vmax.f32 %v765_v47, 0.0 }
 0x1e3   : > { %896 = vmatmul.f32.gmra.mxu2 %v804_v48  ;;  %961 = vmatmul.f32.gmra.mxu3 %v805_v49 }
 0x1e6   : > { %v702_v50 = vpop.f32.mrf.mxu0  ;;  %v767_v51 = vpop.f32.mrf.mxu1 }
 0x1e7   : > { %v703_v52 = vadd.f32 %v702_v50, %v2193_v58  ;;  %v768_v53 = vadd.f32 %v767_v51, %v2195_v59 }
 0x1e9   : > { %v806_v54 = vmax.f32 %v703_v52, 0.0  ;;  %v807_v55 = vmax.f32 %v768_v53, 0.0 }
 0x1eb   : > { %899 = vmatmul.f32.gmra.mxu2 %v806_v54  ;;  %964 = vmatmul.f32.gmra.mxu3 %v807_v55 }
 0x1ee   : > { %v705_v56 = vpop.f32.mrf.mxu0  ;;  %v770_v57 = vpop.f32.mrf.mxu1 }
 0x1ef   : > { %v706_v60 = vadd.f32 %v705_v56, %v2193_v58  ;;  %v771_v61 = vadd.f32 %v770_v57, %v2195_v59 }
 0x1f1   : > { %v808_v62 = vmax.f32 %v706_v60, 0.0  ;;  %v809_v63 = vmax.f32 %v771_v61, 0.0 }
 0x1f3   : > { %902 = vmatmul.f32.gmra.mxu2 %v808_v62  ;;  %967 = vmatmul.f32.gmra.mxu3 %v809_v63 }
 0x1f6   : > { %v708_v0 = vpop.f32.mrf.mxu0  ;;  %v773_v1 = vpop.f32.mrf.mxu1 }
 0x1f7   : > { %v709_v2 = vadd.f32 %v708_v0, %v2193_v58  ;;  %v774_v3 = vadd.f32 %v773_v1, %v2195_v59 }
 0x1f9   : > { %v810_v4 = vmax.f32 %v709_v2, 0.0  ;;  %v811_v5 = vmax.f32 %v774_v3, 0.0 }
 0x1fb   : > { %905 = vmatmul.f32.gmra.mxu2 %v810_v4  ;;  %970 = vmatmul.f32.gmra.mxu3 %v811_v5 }
 0x1fe   : > { %v711_v6 = vpop.f32.mrf.mxu0  ;;  %v776_v7 = vpop.f32.mrf.mxu1 }
 0x1ff   : > { %v712_v8 = vadd.f32 %v711_v6, %v2193_v58  ;;  %v777_v9 = vadd.f32 %v776_v7, %v2195_v59 }
 0x201   : > { %v812_v10 = vmax.f32 %v712_v8, 0.0  ;;  %v813_v11 = vmax.f32 %v777_v9, 0.0 }
 0x203   : > { %908 = vmatmul.f32.gmra.mxu2 %v812_v10  ;;  %973 = vmatmul.f32.gmra.mxu3 %v813_v11 }
 0x206   : > { %v714_v12 = vpop.f32.mrf.mxu0  ;;  %v779_v13 = vpop.f32.mrf.mxu1 }
 0x207   : > { %v715_v14 = vadd.f32 %v714_v12, %v2193_v58  ;;  %v780_v15 = vadd.f32 %v779_v13, %v2195_v59 }
 0x209   : > { %v814_v16 = vmax.f32 %v715_v14, 0.0  ;;  %v815_v17 = vmax.f32 %v780_v15, 0.0 }
 0x20b   : > { %911 = vmatmul.f32.gmra.mxu2 %v814_v16  ;;  %976 = vmatmul.f32.gmra.mxu3 %v815_v17 }
 0x20e   : > { %v717_v18 = vpop.f32.mrf.mxu0  ;;  %v782_v19 = vpop.f32.mrf.mxu1 }
 0x20f   : > { %v718_v20 = vadd.f32 %v717_v18, %v2193_v58  ;;  %v783_v21 = vadd.f32 %v782_v19, %v2195_v59 }
 0x211   : > { %v816_v22 = vmax.f32 %v718_v20, 0.0  ;;  %v817_v23 = vmax.f32 %v783_v21, 0.0 }
 0x213   : > { %914 = vmatmul.f32.gmra.mxu2 %v816_v22  ;;  %979 = vmatmul.f32.gmra.mxu3 %v817_v23 }
 0x216   : > { %v720_v24 = vpop.f32.mrf.mxu0  ;;  %v785_v25 = vpop.f32.mrf.mxu1 }
 0x217   : > { %v721_v26 = vadd.f32 %v720_v24, %v2193_v58  ;;  %v786_v27 = vadd.f32 %v785_v25, %v2195_v59 }
 0x219   : > { %v818_v28 = vmax.f32 %v721_v26, 0.0  ;;  %v819_v29 = vmax.f32 %v786_v27, 0.0 }
 0x21b   : > { %917 = vmatmul.f32.gmra.mxu2 %v818_v28  ;;  %982 = vmatmul.f32.gmra.mxu3 %v819_v29 }
 0x220   : > { %v873_v32 = vpop.f32.mrf.mxu0  ;;  %v938_v33 = vpop.f32.mrf.mxu1 }
 0x221   : > { %v874_v35 = vadd.f32 %v2232_v31, %v873_v32 }
 0x223   : > { %v939_v36 = vadd.f32 %v938_v33, %v874_v35 }
 0x225   : > { %v986_v58 = vmax.f32 %v939_v36, 0.0 }
 0x227   : > { %v2240_v59 = vsel %vm1004_vm2, %v986_v58, -1e+30 }
 0x228   : > { %1021 = vmax.xlane.f32.xlu0 %v2240_v59 }
 0x22e   : > { %v876_v37 = vpop.f32.mrf.mxu2  ;;  %v941_v38 = vpop.f32.mrf.mxu3 }
 0x22f   : > { %v877_v39 = vadd.f32 %v2232_v31, %v876_v37 }
 0x231   : > { %v942_v40 = vadd.f32 %v941_v38, %v877_v39 }
 0x233   : > { %v987_v41 = vmax.f32 %v942_v40, 0.0 }
 0x235   : > { %v2246_v42 = vsel %vm1004_vm2, %v987_v41, -1e+30 }
 0x236   : > { %v879_v43 = vpop.f32.mrf.mxu2  ;;  %1023 = vmax.xlane.f32.xlu0 %v2246_v42  ;;  %v944_v44 = vpop.f32.mrf.mxu3 }
 0x237   : > { %v880_v45 = vadd.f32 %v2232_v31, %v879_v43 }
 0x239   : > { %v945_v46 = vadd.f32 %v944_v44, %v880_v45 }
 0x23b   : > { %v988_v47 = vmax.f32 %v945_v46, 0.0 }
 0x23d   : > { %v2252_v48 = vsel %vm1004_vm2, %v988_v47, -1e+30 }
 0x23e   : > { %v882_v49 = vpop.f32.mrf.mxu2  ;;  %1025 = vmax.xlane.f32.xlu1 %v2252_v48  ;;  %v947_v50 = vpop.f32.mrf.mxu3 }
 0x23f   : > { %v883_v51 = vadd.f32 %v2232_v31, %v882_v49 }
 0x241   : > { %v948_v52 = vadd.f32 %v947_v50, %v883_v51 }
 0x243   : > { %v989_v53 = vmax.f32 %v948_v52, 0.0 }
 0x245   : > { %v2258_v54 = vsel %vm1004_vm2, %v989_v53, -1e+30 }
 0x246   : > { %v885_v55 = vpop.f32.mrf.mxu2  ;;  %1027 = vmax.xlane.f32.xlu1 %v2258_v54  ;;  %v950_v56 = vpop.f32.mrf.mxu3 }
 0x247   : > { %v886_v57 = vadd.f32 %v2232_v31, %v885_v55 }
 0x249   : > { %v951_v60 = vadd.f32 %v950_v56, %v886_v57 }
 0x24b   : > { %v990_v61 = vmax.f32 %v951_v60, 0.0 }
 0x24d   : > { %v2264_v62 = vsel %vm1004_vm2, %v990_v61, -1e+30 }
 0x24e   : > { %v888_v63 = vpop.f32.mrf.mxu2  ;;  %1029 = vmax.xlane.f32.xlu2 %v2264_v62  ;;  %v953_v0 = vpop.f32.mrf.mxu3 }
 0x24f   : > { %v889_v1 = vadd.f32 %v2232_v31, %v888_v63 }
 0x251   : > { %v954_v2 = vadd.f32 %v953_v0, %v889_v1 }
 0x253   : > { %v991_v3 = vmax.f32 %v954_v2, 0.0 }
 0x255   : > { %v2270_v4 = vsel %vm1004_vm2, %v991_v3, -1e+30 }
 0x256   : > { %v891_v5 = vpop.f32.mrf.mxu2  ;;  %1031 = vmax.xlane.f32.xlu2 %v2270_v4  ;;  %v956_v6 = vpop.f32.mrf.mxu3 }
 0x257   : > { %v892_v7 = vadd.f32 %v2232_v31, %v891_v5 }
 0x259   : > { %v957_v8 = vadd.f32 %v956_v6, %v892_v7 }
 0x25b   : > { %v992_v9 = vmax.f32 %v957_v8, 0.0 }
 0x25d   : > { %v2276_v10 = vsel %vm1004_vm2, %v992_v9, -1e+30 }
 0x25e   : > { %v894_v11 = vpop.f32.mrf.mxu2  ;;  %1033 = vmax.xlane.f32.xlu0 %v2276_v10  ;;  %v959_v12 = vpop.f32.mrf.mxu3 }
 0x25f   : > { %v895_v13 = vadd.f32 %v2232_v31, %v894_v11 }
 0x261   : > { %v960_v14 = vadd.f32 %v959_v12, %v895_v13 }
 0x263   : > { %v993_v15 = vmax.f32 %v960_v14, 0.0 }
 0x265   : > { %v2282_v16 = vsel %vm1004_vm2, %v993_v15, -1e+30 }
 0x266   : > { %v897_v17 = vpop.f32.mrf.mxu2  ;;  %1035 = vmax.xlane.f32.xlu1 %v2282_v16  ;;  %v962_v18 = vpop.f32.mrf.mxu3 }
 0x267   : > { %v898_v19 = vadd.f32 %v2232_v31, %v897_v17 }
 0x269   : > { %v963_v20 = vadd.f32 %v962_v18, %v898_v19 }
 0x26b   : > { %v994_v21 = vmax.f32 %v963_v20, 0.0 }
 0x26d   : > { %v2288_v22 = vsel %vm1004_vm2, %v994_v21, -1e+30 }
 0x26e   : > { %v900_v23 = vpop.f32.mrf.mxu2  ;;  %1037 = vmax.xlane.f32.xlu2 %v2288_v22  ;;  %v965_v24 = vpop.f32.mrf.mxu3 }
 0x26f   : > { %v901_v25 = vadd.f32 %v2232_v31, %v900_v23 }
 0x271   : > { %v966_v26 = vadd.f32 %v965_v24, %v901_v25 }
 0x273   : > { %v995_v27 = vmax.f32 %v966_v26, 0.0 }
 0x275   : > { %v2294_v28 = vsel %vm1004_vm2, %v995_v27, -1e+30 }
 0x276   : > { %v903_v29 = vpop.f32.mrf.mxu2  ;;  %1039 = vmax.xlane.f32.xlu0 %v2294_v28  ;;  %v968_v30 = vpop.f32.mrf.mxu3 }
 0x277   : > { %v904_v32 = vadd.f32 %v2232_v31, %v903_v29 }
 0x279   : > { %v969_v33 = vadd.f32 %v968_v30, %v904_v32 }
 0x27b   : > { %v996_v35 = vmax.f32 %v969_v33, 0.0 }
 0x27d   : > { %v2300_v36 = vsel %vm1004_vm2, %v996_v35, -1e+30 }
 0x27e   : > { %v906_v58 = vpop.f32.mrf.mxu2  ;;  %1041 = vmax.xlane.f32.xlu1 %v2300_v36  ;;  %v971_v37 = vpop.f32.mrf.mxu3 }
 0x27f   : > { %v907_v38 = vadd.f32 %v2232_v31, %v906_v58 }
 0x281   : > { %v972_v39 = vadd.f32 %v971_v37, %v907_v38 }
 0x283   : > { %v997_v40 = vmax.f32 %v972_v39, 0.0 }
 0x285   : > { %v2306_v41 = vsel %vm1004_vm2, %v997_v40, -1e+30 }
 0x286   : > { %v909_v43 = vpop.f32.mrf.mxu2  ;;  %1043 = vmax.xlane.f32.xlu2 %v2306_v41  ;;  %v974_v44 = vpop.f32.mrf.mxu3 }
 0x287   : > { %v910_v45 = vadd.f32 %v2232_v31, %v909_v43 }
 0x289   : > { %v975_v46 = vadd.f32 %v974_v44, %v910_v45 }
 0x28b   : > { %v998_v47 = vmax.f32 %v975_v46, 0.0 }
 0x28d   : > { %v2312_v49 = vsel %vm1004_vm2, %v998_v47, -1e+30 }
 0x28e   : > { %v912_v50 = vpop.f32.mrf.mxu2  ;;  %1045 = vmax.xlane.f32.xlu0 %v2312_v49  ;;  %v977_v51 = vpop.f32.mrf.mxu3 }
 0x28f   : > { %v913_v52 = vadd.f32 %v2232_v31, %v912_v50 }
 0x291   : > { %v978_v53 = vadd.f32 %v977_v51, %v913_v52 }
 0x293   : > { %v999_v55 = vmax.f32 %v978_v53, 0.0 }
 0x295   : > { %v2318_v56 = vsel %vm1004_vm2, %v999_v55, -1e+30 }
 0x296   : > { %v915_v57 = vpop.f32.mrf.mxu2  ;;  %1047 = vmax.xlane.f32.xlu1 %v2318_v56  ;;  %v980_v60 = vpop.f32.mrf.mxu3 }
 0x297   : > { %v916_v61 = vadd.f32 %v2232_v31, %v915_v57 }
 0x299   : > { %v981_v63 = vadd.f32 %v980_v60, %v916_v61 }
 0x29b   : > { %v1000_v0 = vmax.f32 %v981_v63, 0.0  ;;  %v1022_v1 = vpop.xlane.xlu0 %1021 }
 0x29c   : > { %v2323_v2 = vsub.f32 %v2240_v59, %v1022_v1 }
 0x29d   : > { %v2327_v3 = vsel %vm1004_vm2, %v1000_v0, -1e+30 }
 0x29e   : > { %v1069_v5 = vmul.f32 1.442695, %v2323_v2  ;;  %v918_v6 = vpop.f32.mrf.mxu2  ;;  %1049 = vmax.xlane.f32.xlu2 %v2327_v3  ;;  %v983_v7 = vpop.f32.mrf.mxu3 }
 0x29f   : > { %v919_v8 = vadd.f32 %v2232_v31, %v918_v6 }
 0x2a0   : > { %1634 = vpow2.f32 %v1069_v5 }
 0x2a1   : > { %v984_v9 = vadd.f32 %v983_v7, %v919_v8 }
 0x2a3   : > { %v1001_v11 = vmax.f32 %v984_v9, 0.0 }
 0x2a5   : > { %v2334_v12 = vsel %vm1004_vm2, %v1001_v11, -1e+30 }
 0x2a6   : > { %v1635_v59 = vpop.eup %1634  ;;  %1051 = vmax.xlane.f32.xlu0 %v2334_v12 }
 0x2a7   : > { %1101 = vadd.xlane.f32.xlu1 %v1635_v59 }
 0x2a9   : > { %v1024_v13 = vpop.xlane.xlu0 %1023 }
 0x2aa   : > { %v2338_v14 = vsub.f32 %v2246_v42, %v1024_v13 }
 0x2ac   : > { %v1071_v15 = vmul.f32 1.442695, %v2338_v14 }
 0x2ae   : > { %1636 = vpow2.f32 %v1071_v15 }
 0x2b1   : > { %v1026_v17 = vpop.xlane.xlu1 %1025 }
 0x2b2   : > { %v2342_v31 = vsub.f32 %v2252_v48, %v1026_v17 }
 0x2b4   : > { %v1637_v18 = vpop.eup %1636  ;;  %v1073_v34 = vmul.f32 1.442695, %v2342_v31 }
 0x2b5   : > { %1103 = vadd.xlane.f32.xlu2 %v1637_v18 }
 0x2b6   : > { %1638 = vpow2.f32 %v1073_v34 }
 0x2b9   : > { %v1028_v19 = vpop.xlane.xlu1 %1027 }
 0x2ba   : > { %v2346_v20 = vsub.f32 %v2258_v54, %v1028_v19 }
 0x2bc   : > { %v1639_v21 = vpop.eup %1638  ;;  %v1075_v42 = vmul.f32 1.442695, %v2346_v20 }
 0x2bd   : > { %1105 = vadd.xlane.f32.xlu0 %v1639_v21 }
 0x2be   : > { %1640 = vpow2.f32 %v1075_v42 }
 0x2c1   : > { %v1030_v23 = vpop.xlane.xlu2 %1029 }
 0x2c2   : > { %v2350_v24 = vsub.f32 %v2264_v62, %v1030_v23 }
 0x2c4   : > { %v1641_v48 = vpop.eup %1640  ;;  %v1077_v25 = vmul.f32 1.442695, %v2350_v24 }
 0x2c5   : > { %1107 = vadd.xlane.f32.xlu1 %v1641_v48 }
 0x2c6   : > { %1642 = vpow2.f32 %v1077_v25 }
 0x2c9   : > { %v1032_v26 = vpop.xlane.xlu2 %1031 }
 0x2ca   : > { %v2354_v27 = vsub.f32 %v2270_v4, %v1032_v26 }
 0x2cc   : > { %v1643_v54 = vpop.eup %1642  ;;  %v1079_v29 = vmul.f32 1.442695, %v2354_v27 }
 0x2cd   : > { %1109 = vadd.xlane.f32.xlu2 %v1643_v54 }
 0x2ce   : > { %1644 = vpow2.f32 %v1079_v29 }
 0x2d1   : > { %v1034_v30 = vpop.xlane.xlu0 %1033 }
 0x2d2   : > { %v2358_v32 = vsub.f32 %v2276_v10, %v1034_v30 }
 0x2d4   : > { %v1645_v62 = vpop.eup %1644  ;;  %v1081_v33 = vmul.f32 1.442695, %v2358_v32 }
 0x2d5   : > { %1111 = vadd.xlane.f32.xlu0 %v1645_v62 }
 0x2d6   : > { %1646 = vpow2.f32 %v1081_v33 }
 0x2d9   : > { %v1036_v35 = vpop.xlane.xlu1 %1035 }
 0x2da   : > { %v2362_v58 = vsub.f32 %v2282_v16, %v1036_v35 }
 0x2dc   : > { %v1647_v4 = vpop.eup %1646  ;;  %v1083_v37 = vmul.f32 1.442695, %v2362_v58 }
 0x2dd   : > { %1113 = vadd.xlane.f32.xlu1 %v1647_v4 }
 0x2de   : > { %1648 = vpow2.f32 %v1083_v37 }
 0x2e1   : > { %v1038_v38 = vpop.xlane.xlu2 %1037 }
 0x2e2   : > { %v2366_v39 = vsub.f32 %v2288_v22, %v1038_v38 }
 0x2e4   : > { %v1649_v10 = vpop.eup %1648  ;;  %v1085_v40 = vmul.f32 1.442695, %v2366_v39 }
 0x2e5   : > { %1115 = vadd.xlane.f32.xlu2 %v1649_v10 }
 0x2e6   : > { %1650 = vpow2.f32 %v1085_v40 }
 0x2e9   : > { %v1040_v43 = vpop.xlane.xlu0 %1039 }
 0x2ea   : > { %v2370_v44 = vsub.f32 %v2294_v28, %v1040_v43 }
 0x2ec   : > { %v1651_v16 = vpop.eup %1650  ;;  %v1087_v45 = vmul.f32 1.442695, %v2370_v44 }
 0x2ed   : > { %1117 = vadd.xlane.f32.xlu0 %v1651_v16 }
 0x2ee   : > { %1652 = vpow2.f32 %v1087_v45 }
 0x2f1   : > { %v1042_v46 = vpop.xlane.xlu1 %1041 }
 0x2f2   : > { %v2374_v47 = vsub.f32 %v2300_v36, %v1042_v46 }
 0x2f4   : > { %v1653_v22 = vpop.eup %1652  ;;  %v1089_v50 = vmul.f32 1.442695, %v2374_v47 }
 0x2f5   : > { %1119 = vadd.xlane.f32.xlu1 %v1653_v22 }
 0x2f6   : > { %1654 = vpow2.f32 %v1089_v50 }
 0x2f9   : > { %v1044_v51 = vpop.xlane.xlu2 %1043 }
 0x2fa   : > { %v2378_v52 = vsub.f32 %v2306_v41, %v1044_v51 }
 0x2fc   : > { %v1655_v28 = vpop.eup %1654  ;;  %v1091_v53 = vmul.f32 1.442695, %v2378_v52 }
 0x2fd   : > { %1121 = vadd.xlane.f32.xlu2 %v1655_v28 }
 0x2fe   : > { %1656 = vpow2.f32 %v1091_v53 }
 0x301   : > { %v1046_v55 = vpop.xlane.xlu0 %1045 }
 0x302   : > { %v2382_v57 = vsub.f32 %v2312_v49, %v1046_v55 }
 0x304   : > { %v1657_v36 = vpop.eup %1656  ;;  %v1093_v60 = vmul.f32 1.442695, %v2382_v57 }
 0x305   : > { %1123 = vadd.xlane.f32.xlu0 %v1657_v36 }
 0x306   : > { %1658 = vpow2.f32 %v1093_v60 }
 0x309   : > { %v1048_v61 = vpop.xlane.xlu1 %1047 }
 0x30a   : > { %v2386_v63 = vsub.f32 %v2318_v56, %v1048_v61 }
 0x30c   : > { %v1659_v41 = vpop.eup %1658  ;;  %v1095_v0 = vmul.f32 1.442695, %v2386_v63 }
 0x30d   : > { %1125 = vadd.xlane.f32.xlu1 %v1659_v41 }
 0x30e   : > { %1660 = vpow2.f32 %v1095_v0 }
 0x311   : > { %v1050_v1 = vpop.xlane.xlu2 %1049 }
 0x312   : > { %v2390_v5 = vsub.f32 %v2327_v3, %v1050_v1 }
 0x314   : > { %v1661_v49 = vpop.eup %1660  ;;  %v1097_v6 = vmul.f32 1.442695, %v2390_v5 }
 0x315   : > { %1127 = vadd.xlane.f32.xlu2 %v1661_v49 }
 0x316   : > { %1662 = vpow2.f32 %v1097_v6 }
 0x319   : > { %v1052_v7 = vpop.xlane.xlu0 %1051 }
 0x31a   : > { %v2394_v8 = vsub.f32 %v2334_v12, %v1052_v7  ;;  %v1102_v56 = vpop.xlane.xlu1 %1101 }
 0x31b   : > { %1664 = vlog2.f32 %v1102_v56 }
 0x31c   : > { %v1663_v9 = vpop.eup %1662  ;;  %v1099_v11 = vmul.f32 1.442695, %v2394_v8 }
 0x31d   : > { %1129 = vadd.xlane.f32.xlu0 %v1663_v9 }
 0x31e   : > { %1666 = vpow2.f32 %v1099_v11 }
 0x321   : > { %v1665_v3 = vpop.eup %1664 }
 0x322   : > { %v1134_v59 = vmul.f32 0.6931472, %v1665_v3 }
 0x324   : > { %v1667_v13 = vpop.eup %1666  ;;  %v1165_v15 = vsub.f32 %v2323_v2, %v1134_v59 }
 0x325   : > { %1131 = vadd.xlane.f32.xlu1 %v1667_v13 }
 0x326   : > { %1181 = vst [vmem:[%s2082_s18] sm:$0xff] %v1165_v15 }
 0x328   : > { %v1104_v17 = vpop.xlane.xlu2 %1103 }
 0x329   : > { %1668 = vlog2.f32 %v1104_v17 }
 0x32f   : > { %v1669_v12 = vpop.eup %1668 }
 0x330   : > { %v1136_v18 = vmul.f32 0.6931472, %v1669_v12  ;;  %v1106_v34 = vpop.xlane.xlu0 %1105 }
 0x331   : > { %1670 = vlog2.f32 %v1106_v34 }
 0x332   : > { %v1166_v19 = vsub.f32 %v2338_v14, %v1136_v18 }
 0x334   : > { %1182 = vst [vmem:[%s2082_s18 + $0x8] sm:$0xff] %v1166_v19 }
 0x337   : > { %v1671_v21 = vpop.eup %1670 }
 0x338   : > { %v1138_v42 = vmul.f32 0.6931472, %v1671_v21  ;;  %v1108_v23 = vpop.xlane.xlu1 %1107 }
 0x339   : > { %1672 = vlog2.f32 %v1108_v23 }
 0x33a   : > { %v1167_v2 = vsub.f32 %v2342_v31, %v1138_v42 }
 0x33c   : > { %1183 = vst [vmem:[%s2082_s18 + $0x10] sm:$0xff] %v1167_v2 }
 0x33f   : > { %v1673_v48 = vpop.eup %1672 }
 0x340   : > { %v1140_v25 = vmul.f32 0.6931472, %v1673_v48  ;;  %v1110_v26 = vpop.xlane.xlu2 %1109 }
 0x341   : > { %1674 = vlog2.f32 %v1110_v26 }
 0x342   : > { %v1168_v54 = vsub.f32 %v2346_v20, %v1140_v25 }
 0x344   : > { %1184 = vst [vmem:[%s2082_s18 + $0x18] sm:$0xff] %v1168_v54 }
 0x347   : > { %v1675_v29 = vpop.eup %1674 }
 0x348   : > { %v1142_v30 = vmul.f32 0.6931472, %v1675_v29  ;;  %v1112_v14 = vpop.xlane.xlu0 %1111 }
 0x349   : > { %1676 = vlog2.f32 %v1112_v14 }
 0x34a   : > { %v1169_v62 = vsub.f32 %v2350_v24, %v1142_v30 }
 0x34c   : > { %1185 = vst [vmem:[%s2082_s18 + $0x20] sm:$0xff] %v1169_v62 }
 0x34f   : > { %v1677_v33 = vpop.eup %1676 }
 0x350   : > { %v1144_v35 = vmul.f32 0.6931472, %v1677_v33  ;;  %v1114_v31 = vpop.xlane.xlu1 %1113 }
 0x351   : > { %1678 = vlog2.f32 %v1114_v31 }
 0x352   : > { %v1170_v4 = vsub.f32 %v2354_v27, %v1144_v35 }
 0x354   : > { %1186 = vst [vmem:[%s2082_s18 + $0x28] sm:$0xff] %v1170_v4 }
 0x357   : > { %v1679_v37 = vpop.eup %1678 }
 0x358   : > { %v1146_v38 = vmul.f32 0.6931472, %v1679_v37  ;;  %v1116_v20 = vpop.xlane.xlu2 %1115 }
 0x359   : > { %1680 = vlog2.f32 %v1116_v20 }
 0x35a   : > { %v1171_v10 = vsub.f32 %v2358_v32, %v1146_v38 }
 0x35c   : > { %1187 = vst [vmem:[%s2082_s18 + $0x30] sm:$0xff] %v1171_v10 }
 0x35f   : > { %v1681_v40 = vpop.eup %1680 }
 0x360   : > { %v1148_v43 = vmul.f32 0.6931472, %v1681_v40  ;;  %v1118_v24 = vpop.xlane.xlu0 %1117 }
 0x361   : > { %1682 = vlog2.f32 %v1118_v24 }
 0x362   : > { %v1172_v16 = vsub.f32 %v2362_v58, %v1148_v43 }
 0x364   : > { %1188 = vst [vmem:[%s2082_s18 + $0x38] sm:$0xff] %v1172_v16 }
 0x367   : > { %v1683_v45 = vpop.eup %1682 }
 0x368   : > { %v1150_v46 = vmul.f32 0.6931472, %v1683_v45  ;;  %v1120_v27 = vpop.xlane.xlu1 %1119 }
 0x369   : > { %1684 = vlog2.f32 %v1120_v27 }
 0x36a   : > { %v1173_v22 = vsub.f32 %v2366_v39, %v1150_v46 }
 0x36c   : > { %1189 = vst [vmem:[%s2082_s18 + $0x40] sm:$0xff] %v1173_v22 }
 0x36f   : > { %v1685_v50 = vpop.eup %1684 }
 0x370   : > { %v1152_v51 = vmul.f32 0.6931472, %v1685_v50  ;;  %v1122_v32 = vpop.xlane.xlu2 %1121 }
 0x371   : > { %1686 = vlog2.f32 %v1122_v32 }
 0x372   : > { %v1174_v28 = vsub.f32 %v2370_v44, %v1152_v51 }
 0x374   : > { %1190 = vst [vmem:[%s2082_s18 + $0x48] sm:$0xff] %v1174_v28 }
 0x377   : > { %v1687_v53 = vpop.eup %1686 }
 0x378   : > { %v1154_v55 = vmul.f32 0.6931472, %v1687_v53  ;;  %v1124_v58 = vpop.xlane.xlu0 %1123 }
 0x379   : > { %1688 = vlog2.f32 %v1124_v58 }
 0x37a   : > { %v1175_v36 = vsub.f32 %v2374_v47, %v1154_v55 }
 0x37c   : > { %1191 = vst [vmem:[%s2082_s18 + $0x50] sm:$0xff] %v1175_v36 }
 0x37f   : > { %v1689_v60 = vpop.eup %1688 }
 0x380   : > { %v1156_v61 = vmul.f32 0.6931472, %v1689_v60  ;;  %v1126_v39 = vpop.xlane.xlu1 %1125 }
 0x381   : > { %1690 = vlog2.f32 %v1126_v39 }
 0x382   : > { %v1176_v41 = vsub.f32 %v2378_v52, %v1156_v61 }
 0x384   : > { %1192 = vst [vmem:[%s2082_s18 + $0x58] sm:$0xff] %v1176_v41 }
 0x387   : > { %v1691_v0 = vpop.eup %1690 }
 0x388   : > { %v1158_v1 = vmul.f32 0.6931472, %v1691_v0  ;;  %v1128_v44 = vpop.xlane.xlu2 %1127 }
 0x389   : > { %1692 = vlog2.f32 %v1128_v44 }
 0x38a   : > { %v1177_v49 = vsub.f32 %v2382_v57, %v1158_v1 }
 0x38c   : > { %1193 = vst [vmem:[%s2082_s18 + $0x60] sm:$0xff] %v1177_v49 }
 0x38f   : > { %v1693_v6 = vpop.eup %1692 }
 0x390   : > { %v1160_v47 = vmul.f32 0.6931472, %v1693_v6  ;;  %v1130_v7 = vpop.xlane.xlu0 %1129 }
 0x391   : > { %1694 = vlog2.f32 %v1130_v7 }
 0x392   : > { %v1178_v56 = vsub.f32 %v2386_v63, %v1160_v47 }
 0x394   : > { %1194 = vst [vmem:[%s2082_s18 + $0x68] sm:$0xff] %v1178_v56 }
 0x397   : > { %v1695_v9 = vpop.eup %1694 }
 0x398   : > { %v1162_v11 = vmul.f32 0.6931472, %v1695_v9  ;;  %v1132_v52 = vpop.xlane.xlu1 %1131 }
 0x399   : > { %1696 = vlog2.f32 %v1132_v52 }
 0x39a   : > { %v1179_v3 = vsub.f32 %v2390_v5, %v1162_v11 }
 0x39c   : > { %1195 = vst [vmem:[%s2082_s18 + $0x70] sm:$0xff] %v1179_v3 }
 0x39f   : > { %v1697_v59 = vpop.eup %1696 }
 0x3a0   : > { %v1164_v13 = vmul.f32 0.6931472, %v1697_v59 }
 0x3a2   : > { %v1180_v57 = vsub.f32 %v2394_v8, %v1164_v13 }
 0x3a4   : > { %1196 = vst [vmem:[%s2082_s18 + $0x78] sm:$0xff] %v1180_v57 }
 0x3a5 PF: > { %s2524_s17 = sld [smem:[#allocation13_spill]]  ;;  %s1210_s5 = sshll.u32 %s2082_s18, 4  ;;  %s1211_s5 = int_to_ptr.vmem [resolvable:$true] %s1210_s5 }
 0x3a6   : > { %s2526_s2 = sld [smem:[#allocation23_spill]]  ;;  %s1198_s14 = scalar_lea.sflag [#allocation5], %s318_s1 }
 0x3ab   : > { %s1456_s12 = sshll.u32 %s2524_s17, 7 }
 0x3ac   : > { %s1209_s3 = scalar_lea.hbm %s2526_s2, %s1456_s12  ;;  %s1778_s19 = scalar_lea.hbm %s2526_s2, 256 }
 0x3ad   : > { %s1212_s28 = sshll.u32 %s1209_s3, 4  ;;  %s1213_s28 = int_to_ptr.hbm [resolvable:$true] %s1212_s28 }
 0x3ae   : > { %s1772_s9 = sshra.s32 %s1213_s28, 4  ;;  %s1773_s9 = int_to_ptr.hbm [resolvable:$true] %s1772_s9 }
 0x3af   : > { %s1774_s11 = scalar_lea.hbm %s1773_s9, 128  ;;  %p1779_p5 = scmp.lt.s32.totalorder %s1773_s9, %s2526_s2 }
 0x3b0   : > { %p1775_p0 = scmp.ne.s32.totalorder %s1773_s9, %s1774_s11  ;;  %p1780_p7 = scmp.lt.s32.totalorder %s1778_s19, %s1774_s11 }
 0x3b2   : > { %p1776_p2 = pnand %p1775_p0, %p1999_p6  ;;  %p1781_p8 = por %p1780_p7, %p1779_p5 }
 0x3b4   : > { %p1777_p3 = pneg %p1776_p2 }
 0x3b6   : > { %p1782_p9 = pnand %p1781_p8, %p1777_p3 }
 0x3b8   : > { %1785 = shalt.err (!%p1782_p9)
}
 0x3b9   : > { %s1892_s1 = smov 128   ;;  %s1893_s18 = smov 8  }
 0x3ba   : > { %1519 = dma.vmem_to_hbm [thread:$0]  (%p1999_p6), %s1211_s5, 2048, %s1213_s28, %s1198_s14, %s1892_s1, %s1892_s1, %s1893_s18  }
 0x3bb PF: > { %s2527_s20 = sld [smem:[#allocation12_spill]]  ;;  %p1536_p12 = scmp.ge.s32.totalorder %s1884_s7, 2 }
 0x3bd   : > { %p1530_p13 = pnand %p1536_p12, %p2005_p10 }
 0x3bf   : > { %p1531_p11 = pneg %p1530_p13 }
 0x3c1   : > { %s1227_s12 = sand.u32 1, %s2527_s20  }
 0x3c2   : > { %s1228_s13 = scalar_lea.sflag [#allocation5], %s1227_s12 }
 0x3c3   : > { %1839 = dma.done.wait (%p1531_p11), %s1228_s13, 2048  }
 0x3c4   : > { %1841 = vsyncadd (%p1531_p11), %s1228_s13, 4294965248  ;;  %s23_s7 = sadd.s32 1, %s1884_s7   ;;  %s2529_s6 = smov %s2049_s21 }
 0x3c5   : > { %p20_p4 = scmp.ge.s32.totalorder %s23_s7, 6   ;;  %s2530_s3 = sld [smem:[#allocation16_spill]] }
 0x3c6   : > { %s2531_s5 = sld [smem:[#allocation17_spill]]  ;;  %s2532_s21 = smov %s1848_s22 }
 0x3c7   : > { %s2533_s22 = smov %s1852_s23  ;;  %s2534_s23 = smov %s2046_s8 }
 0x3c8   : > { %s2535_s24 = smov %s1860_s25  ;;  %s2536_s25 = smov %s1864_s26 }
 0x3c9   : > { %s2537_s26 = smov %s2529_s6  ;;  %s2538_s27 = smov %s1876_s29 }
 0x3ca   : > { %s2539_s28 = smov %s1880_s30  ;;  %22 = sbr.rel (!%p20_p4) target bundleno = 17 (0x11), region = 104 }
 0x3cb   : > { %s2540_s29 = smov %s2530_s3 }
 0x3cc   : > { %s2541_s30 = smov %s2531_s5 }
 0x3cf   :  { %1234 = vsyncpa [#allocation4], 1 }
 0x3d0   :  { %1236 = vsyncpa [#allocation4 + $0x1], 1 }
 0x3d1   :  { %1237 = vsyncpa [#allocation7], 1 }
 0x3d2   :  { %1238 = vsyncpa [#allocation5], 1 }
 0x3d3   :  { %1240 = vsyncpa [#allocation5 + $0x1], 1 }

</bundles_post_ra>
